<compile_context>
chip_gen: v6e
topology: v6e:2x2x1
jax: 0.10.0
libtpu: 0.0.40
codegen_flags: <defaults>
</compile_context>

<pallas_src>
import jax
import jax.numpy as jnp
from jax import lax
from jax.experimental import pallas as pl
from jax.experimental.pallas import tpu as pltpu

NC_PAD = 128  # classifier logits padded to a full lane tile inside the kernel


# ----------------------------------------------------------------------------
# Fused kernel: ReLU -> AvgPool(5,3) -> Conv1x1+BN+ReLU -> Conv2x2+BN+ReLU -> FC
# ----------------------------------------------------------------------------
def aux_head_kernel(x_ref, w1_ref, b1_ref, w2_ref, b2_ref, w3_ref, b3_ref, o_ref):
    mm_dtype = w1_ref.dtype                      # matmul operand dtype (bf16)

    x = jnp.maximum(x_ref[...], 0.0)             # fused ReLU, (nb, 8, 8, C) f32

    # ---- AvgPool2d(5, stride=3, padding=0): 8x8 -> 2x2 ---------------------
    # padding=0, so count_include_pad=False is moot; the 1/25 divisor is folded
    # into w1.  Sum over H first (leading-axis VPU adds, sharing rows 3-4),
    # then one 5-wide sublane-window reduce over W per output column.
    s34 = x[:, 3] + x[:, 4]                      # shared middle rows, (nb, 8, C)
    rh0 = x[:, 0] + x[:, 1] + x[:, 2] + s34      # H-window sum, output row 0
    rh1 = s34 + x[:, 5] + x[:, 6] + x[:, 7]      # H-window sum, output row 1

    def w_window(r):                             # (nb, 8, C) -> two (nb, C)
        return (jnp.sum(r[:, 0:5, :], axis=1),   # output col 0 (W rows 0..4)
                jnp.sum(r[:, 3:8, :], axis=1))   # output col 1 (W rows 3..7)

    p00, p01 = w_window(rh0)
    p10, p11 = w_window(rh1)                     # pos = i*2 + j, each (nb, C)

    # ---- Conv1x1+BN+ReLU then the matching 2x2-conv weight block, fused per
    #      pooled position; accumulate conv2 directly (no (4nb,3072) temp). ---
    acc = b2_ref[...]                            # (1, 768) f32, broadcasts over rows
    for pos, ppos in enumerate((p00, p01, p10, p11)):
        h = jnp.dot(ppos.astype(mm_dtype), w1_ref[...],
                    preferred_element_type=jnp.float32) + b1_ref[...]
        h = jnp.maximum(h, 0.0)                  # (nb, 128)
        acc = acc + jnp.dot(h.astype(mm_dtype),
                            w2_ref[pos * 128:(pos + 1) * 128, :],
                            preferred_element_type=jnp.float32)   # (nb, 768)
    y = jnp.maximum(acc, 0.0)                    # (nb, 768) f32

    # ---- Linear(768, num_classes), weights zero-padded to 128 lanes --------
    logits = jnp.dot(y.astype(mm_dtype), w3_ref[...],
                     preferred_element_type=jnp.float32) + b3_ref[...]
    o_ref[...] = logits                          # (nb, 128) lane-dense, unmasked store


# ----------------------------------------------------------------------------
# Wrapper: single pallas_call, batch-tiled parallel grid
# ----------------------------------------------------------------------------
def _pick_batch_tile(n):
    """Default batch tile: multiple of 8 when tiling (aligned blocks/stores),
    capped at 128 rows (keeps the x block well inside v7x's 64 MiB VMEM /
    32 MiB scoped default), and >= 2 grid steps when possible so the
    "parallel" grid axis can shard across v7x's two TensorCores."""
    if n <= 8:
        return n
    bt = min(128, max(8, n // 2))
    bt -= bt % 8
    while bt > 8 and n % bt:
        bt -= 8
    return bt if (bt > 0 and n % bt == 0) else n


def aux_head_forward(x, params, num_classes, batch_tile=None):
    """x: (N, 8, 8, C) NHWC float32 -> logits (N, num_classes)."""
    n, hh, ww, c = x.shape
    assert (hh, ww) == (8, 8), "AuxiliaryHeadCIFAR assumes 8x8 input"
    assert num_classes <= NC_PAD
    bn = _pick_batch_tile(n) if batch_tile is None else min(batch_tile, n)
    assert n % bn == 0
    # Partial tiles must be sublane-aligned ((8,128) BlockSpec divisibility).
    assert bn == n or bn % 8 == 0, "batch_tile < N must be a multiple of 8"

    def whole(arr):  # whole-array block, same (constant) block every grid step
        nd = arr.ndim
        return pl.BlockSpec(arr.shape, lambda b, _nd=nd: (0,) * _nd)

    # Advisory cost hint for XLA scheduling around this small latency-bound call.
    flops = int(2 * n * (4 * c * 128 + 4 * 128 * 768 + 768 * NC_PAD))
    bytes_accessed = int(
        sum(int(v.size) * v.dtype.itemsize for v in params.values())
        + int(x.size) * x.dtype.itemsize + n * NC_PAD * 4)

    out = pl.pallas_call(
        aux_head_kernel,
        out_shape=jax.ShapeDtypeStruct((n, NC_PAD), jnp.float32),
        grid=(n // bn,),
        in_specs=[
            pl.BlockSpec((bn, 8, 8, c), lambda b: (b, 0, 0, 0)),
            whole(params["w1"]), whole(params["b1"]),
            whole(params["w2"]), whole(params["b2"]),
            whole(params["w3"]), whole(params["b3"]),
        ],
        out_specs=pl.BlockSpec((bn, NC_PAD), lambda b: (b, 0)),
        compiler_params=pltpu.CompilerParams(
            dimension_semantics=("parallel",)),
        cost_estimate=pl.CostEstimate(
            flops=flops, transcendentals=0, bytes_accessed=bytes_accessed),
    )(x, params["w1"], params["b1"], params["w2"], params["b2"],
      params["w3"], params["b3"])
    return out[:, :num_classes]


# ----------------------------------------------------------------------------
# Deterministic parameters (PyTorch-style raw params) + BN / pool folding
# ----------------------------------------------------------------------------
def init_raw_params(key, c_in, num_classes):
    ks = jax.random.split(key, 6)

    def bn_params(k, c):
        kg, kb, km, kv = jax.random.split(k, 4)
        return dict(
            gamma=jax.random.uniform(kg, (c,), jnp.float32, 0.5, 1.5),
            beta=jax.random.normal(kb, (c,), jnp.float32) * 0.1,
            mean=jax.random.normal(km, (c,), jnp.float32) * 0.1,
            var=jax.random.uniform(kv, (c,), jnp.float32, 0.5, 1.5),
        )

    return dict(
        conv1_w=jax.random.normal(ks[0], (128, c_in), jnp.float32) * (c_in ** -0.5),
        bn1=bn_params(ks[1], 128),
        conv2_w=jax.random.normal(ks[2], (768, 128, 2, 2), jnp.float32) * ((128 * 4) ** -0.5),
        bn2=bn_params(ks[3], 768),
        fc_w=jax.random.normal(ks[4], (num_classes, 768), jnp.float32) * (768 ** -0.5),
        fc_b=jax.random.normal(ks[5], (num_classes,), jnp.float32) * 0.1,
    )


def fold_params(raw, eps=1e-5, matmul_dtype=jnp.bfloat16):
    """Fold eval-mode BN + the 1/25 avg-pool divisor into the conv weights and
    lay weights out for the kernel.  Matmul weights stored in `matmul_dtype`
    (bf16: MXU-native on v5e/v6e/v7x, half the HBM/VMEM weight bytes); bias /
    shift terms stay f32."""
    # Conv1 (1x1) + BN1 (+ pool divisor): w1[ci, co] = conv1_w[co, ci]*s1[co]/25
    s1 = raw["bn1"]["gamma"] / jnp.sqrt(raw["bn1"]["var"] + eps)
    w1 = (raw["conv1_w"].T * s1[None, :]) * (1.0 / 25.0)                  # (C, 128)
    b1 = (raw["bn1"]["beta"] - raw["bn1"]["mean"] * s1)[None, :]          # (1, 128)

    # Conv2 (2x2) + BN2: per position (kh,kw) block (128, 768), stacked on the
    # contraction (sublane) axis -> (512, 768); pos = kh*2 + kw.
    s2 = raw["bn2"]["gamma"] / jnp.sqrt(raw["bn2"]["var"] + eps)
    w2s = raw["conv2_w"] * s2[:, None, None, None]                        # (768,128,2,2)
    w2 = jnp.concatenate(
        [w2s[:, :, kh, kw].T for kh in range(2) for kw in range(2)], axis=0)  # (512, 768)
    b2 = (raw["bn2"]["beta"] - raw["bn2"]["mean"] * s2)[None, :]          # (1, 768)

    # Classifier, zero-padded to NC_PAD output lanes.
    nc = raw["fc_w"].shape[0]
    w3 = jnp.zeros((768, NC_PAD), jnp.float32).at[:, :nc].set(raw["fc_w"].T)
    b3 = jnp.zeros((1, NC_PAD), jnp.float32).at[:, :nc].set(raw["fc_b"][None, :])

    return dict(w1=w1.astype(matmul_dtype), b1=b1,
                w2=w2.astype(matmul_dtype), b2=b2,
                w3=w3.astype(matmul_dtype), b3=b3)


# ----------------------------------------------------------------------------
# Pure-JAX reference (unfolded BN, eval mode) for a correctness check
# ----------------------------------------------------------------------------
def reference_forward(x_nhwc, raw, eps=1e-5):
    hp = lax.Precision.HIGHEST
    x = jnp.maximum(x_nhwc, 0.0)
    pooled = jnp.stack(
        [jnp.stack([jnp.mean(x[:, 3 * i:3 * i + 5, 3 * j:3 * j + 5, :], axis=(1, 2))
                    for j in range(2)], axis=1)
         for i in range(2)], axis=1)                                      # (N, 2, 2, C)
    h = jnp.einsum("nijc,kc->nijk", pooled, raw["conv1_w"], precision=hp)
    s1 = raw["bn1"]["gamma"] / jnp.sqrt(raw["bn1"]["var"] + eps)
    h = jnp.maximum(h * s1 + (raw["bn1"]["beta"] - raw["bn1"]["mean"] * s1), 0.0)
    y = jnp.einsum("nijk,okij->no", h, raw["conv2_w"], precision=hp)
    s2 = raw["bn2"]["gamma"] / jnp.sqrt(raw["bn2"]["var"] + eps)
    y = jnp.maximum(y * s2 + (raw["bn2"]["beta"] - raw["bn2"]["mean"] * s2), 0.0)
    return jnp.einsum("nk,ok->no", y, raw["fc_w"], precision=hp) + raw["fc_b"]


# ----------------------------------------------------------------------------
if __name__ == "__main__":
    key = jax.random.PRNGKey(0)
    kx, kp = jax.random.split(key)

    N, H, W, C = 2, 8, 8, 128     # NHWC; PyTorch equivalent input is NCHW (2, 128, 8, 8)
    NUM_CLASSES = 10

    x = jax.random.normal(kx, (N, H, W, C), jnp.float32)
    raw = init_raw_params(kp, C, NUM_CLASSES)
    params = fold_params(raw)     # bf16 matmul weights, f32 bias/shift terms

    fwd = jax.jit(aux_head_forward, static_argnums=(2,))
    out = fwd(x, params, NUM_CLASSES)
    jax.block_until_ready(out)

    assert out.shape == (N, NUM_CLASSES), out.shape
    assert bool(jnp.all(jnp.isfinite(out)))

    ref = reference_forward(x, raw)
    max_err = float(jnp.max(jnp.abs(out - ref)))
    scale = max(float(jnp.max(jnp.abs(ref))), 1.0)
    # bf16 matmul operands vs f32 reference: allow a modest relative tolerance.
    assert max_err <= 6e-2 * scale, (max_err, scale)

    print("KERNEL_OK")
</pallas_src>

<mosaic_0001>
module attributes {stable_mosaic.version = 11 : i64} {
  func.func @aux_head_kernel(%arg0: i32, %arg1: memref<2x8x8x128xf32, #tpu.memory_space<vmem>>, %arg2: memref<128x128xbf16, #tpu.memory_space<vmem>>, %arg3: memref<1x128xf32, #tpu.memory_space<vmem>>, %arg4: memref<512x768xbf16, #tpu.memory_space<vmem>>, %arg5: memref<1x768xf32, #tpu.memory_space<vmem>>, %arg6: memref<768x128xbf16, #tpu.memory_space<vmem>>, %arg7: memref<1x128xf32, #tpu.memory_space<vmem>>, %arg8: memref<2x128xf32, #tpu.memory_space<vmem>>) attributes {dimension_semantics = [#tpu.dimension_semantics<parallel>], iteration_bounds = array<i64: 1>, scalar_prefetch = 0 : i64, scratch_operands = 0 : i64, tpu.core_type = #tpu.core_type<tc>, window_params = [{transform_indices = @transform_0, window_bounds = array<i64: 2, 8, 8, 128>}, {pipeline_mode = #tpu.pipeline_mode<synchronous>, transform_indices = @transform_1, window_bounds = array<i64: 128, 128>}, {pipeline_mode = #tpu.pipeline_mode<synchronous>, transform_indices = @transform_2, window_bounds = array<i64: 1, 128>}, {pipeline_mode = #tpu.pipeline_mode<synchronous>, transform_indices = @transform_3, window_bounds = array<i64: 512, 768>}, {pipeline_mode = #tpu.pipeline_mode<synchronous>, transform_indices = @transform_4, window_bounds = array<i64: 1, 768>}, {pipeline_mode = #tpu.pipeline_mode<synchronous>, transform_indices = @transform_5, window_bounds = array<i64: 768, 128>}, {pipeline_mode = #tpu.pipeline_mode<synchronous>, transform_indices = @transform_6, window_bounds = array<i64: 1, 128>}, {transform_indices = @transform_7, window_bounds = array<i64: 2, 128>}]} {
    %c0 = arith.constant 0 : index
    %c0_0 = arith.constant 0 : index
    %c0_1 = arith.constant 0 : index
    %c0_2 = arith.constant 0 : index
    %0 = vector.load %arg1[%c0, %c0_0, %c0_1, %c0_2] : memref<2x8x8x128xf32, #tpu.memory_space<vmem>>, vector<2x8x8x128xf32>
    %cst = arith.constant 0.000000e+00 : f32
    %1 = vector.broadcast %cst : f32 to vector<2x8x8x128xf32>
    %2 = arith.maximumf %0, %1 : vector<2x8x8x128xf32>
    %3 = vector.extract_strided_slice %2 {offsets = [0, 3, 0, 0], sizes = [2, 1, 8, 128], strides = [1, 1, 1, 1]} : vector<2x8x8x128xf32> to vector<2x1x8x128xf32>
    %4 = vector.shape_cast %3 : vector<2x1x8x128xf32> to vector<2x8x128xf32>
    %5 = vector.extract_strided_slice %2 {offsets = [0, 4, 0, 0], sizes = [2, 1, 8, 128], strides = [1, 1, 1, 1]} : vector<2x8x8x128xf32> to vector<2x1x8x128xf32>
    %6 = vector.shape_cast %5 : vector<2x1x8x128xf32> to vector<2x8x128xf32>
    %7 = arith.addf %4, %6 : vector<2x8x128xf32>
    %8 = vector.extract_strided_slice %2 {offsets = [0, 0, 0, 0], sizes = [2, 1, 8, 128], strides = [1, 1, 1, 1]} : vector<2x8x8x128xf32> to vector<2x1x8x128xf32>
    %9 = vector.shape_cast %8 : vector<2x1x8x128xf32> to vector<2x8x128xf32>
    %10 = vector.extract_strided_slice %2 {offsets = [0, 1, 0, 0], sizes = [2, 1, 8, 128], strides = [1, 1, 1, 1]} : vector<2x8x8x128xf32> to vector<2x1x8x128xf32>
    %11 = vector.shape_cast %10 : vector<2x1x8x128xf32> to vector<2x8x128xf32>
    %12 = arith.addf %9, %11 : vector<2x8x128xf32>
    %13 = vector.extract_strided_slice %2 {offsets = [0, 2, 0, 0], sizes = [2, 1, 8, 128], strides = [1, 1, 1, 1]} : vector<2x8x8x128xf32> to vector<2x1x8x128xf32>
    %14 = vector.shape_cast %13 : vector<2x1x8x128xf32> to vector<2x8x128xf32>
    %15 = arith.addf %12, %14 : vector<2x8x128xf32>
    %16 = arith.addf %15, %7 : vector<2x8x128xf32>
    %17 = vector.extract_strided_slice %2 {offsets = [0, 5, 0, 0], sizes = [2, 1, 8, 128], strides = [1, 1, 1, 1]} : vector<2x8x8x128xf32> to vector<2x1x8x128xf32>
    %18 = vector.shape_cast %17 : vector<2x1x8x128xf32> to vector<2x8x128xf32>
    %19 = arith.addf %7, %18 : vector<2x8x128xf32>
    %20 = vector.extract_strided_slice %2 {offsets = [0, 6, 0, 0], sizes = [2, 1, 8, 128], strides = [1, 1, 1, 1]} : vector<2x8x8x128xf32> to vector<2x1x8x128xf32>
    %21 = vector.shape_cast %20 : vector<2x1x8x128xf32> to vector<2x8x128xf32>
    %22 = arith.addf %19, %21 : vector<2x8x128xf32>
    %23 = vector.extract_strided_slice %2 {offsets = [0, 7, 0, 0], sizes = [2, 1, 8, 128], strides = [1, 1, 1, 1]} : vector<2x8x8x128xf32> to vector<2x1x8x128xf32>
    %24 = vector.shape_cast %23 : vector<2x1x8x128xf32> to vector<2x8x128xf32>
    %25 = arith.addf %22, %24 : vector<2x8x128xf32>
    %26 = vector.extract_strided_slice %16 {offsets = [0, 0, 0], sizes = [2, 5, 128], strides = [1, 1, 1]} : vector<2x8x128xf32> to vector<2x5x128xf32>
    %cst_3 = arith.constant dense<0.000000e+00> : vector<2x128xf32>
    %27 = vector.multi_reduction <add>, %26, %cst_3 [1] : vector<2x5x128xf32> to vector<2x128xf32>
    %28 = vector.extract_strided_slice %16 {offsets = [0, 3, 0], sizes = [2, 5, 128], strides = [1, 1, 1]} : vector<2x8x128xf32> to vector<2x5x128xf32>
    %cst_4 = arith.constant dense<0.000000e+00> : vector<2x128xf32>
    %29 = vector.multi_reduction <add>, %28, %cst_4 [1] : vector<2x5x128xf32> to vector<2x128xf32>
    %30 = vector.extract_strided_slice %25 {offsets = [0, 0, 0], sizes = [2, 5, 128], strides = [1, 1, 1]} : vector<2x8x128xf32> to vector<2x5x128xf32>
    %cst_5 = arith.constant dense<0.000000e+00> : vector<2x128xf32>
    %31 = vector.multi_reduction <add>, %30, %cst_5 [1] : vector<2x5x128xf32> to vector<2x128xf32>
    %32 = vector.extract_strided_slice %25 {offsets = [0, 3, 0], sizes = [2, 5, 128], strides = [1, 1, 1]} : vector<2x8x128xf32> to vector<2x5x128xf32>
    %cst_6 = arith.constant dense<0.000000e+00> : vector<2x128xf32>
    %33 = vector.multi_reduction <add>, %32, %cst_6 [1] : vector<2x5x128xf32> to vector<2x128xf32>
    %c0_7 = arith.constant 0 : index
    %c0_8 = arith.constant 0 : index
    %34 = vector.load %arg5[%c0_7, %c0_8] : memref<1x768xf32, #tpu.memory_space<vmem>>, vector<1x768xf32>
    %35 = arith.truncf %27 : vector<2x128xf32> to vector<2x128xbf16>
    %c0_9 = arith.constant 0 : index
    %c0_10 = arith.constant 0 : index
    %36 = vector.load %arg2[%c0_9, %c0_10] : memref<128x128xbf16, #tpu.memory_space<vmem>>, vector<128x128xbf16>
    %cst_11 = arith.constant dense<0.000000e+00> : vector<2x128xf32>
    %37 = tpu.matmul %35, %36, %cst_11 {dimension_numbers = #tpu.dot_dimension_numbers<[1], [0], [0], [1], [0, 0, 1, 1], [], []>} : vector<2x128xbf16>, vector<128x128xbf16>, vector<2x128xf32> -> vector<2x128xf32>
    %c0_12 = arith.constant 0 : index
    %c0_13 = arith.constant 0 : index
    %38 = vector.load %arg3[%c0_12, %c0_13] : memref<1x128xf32, #tpu.memory_space<vmem>>, vector<1x128xf32>
    %39 = vector.broadcast %38 : vector<1x128xf32> to vector<2x128xf32>
    %40 = arith.addf %37, %39 : vector<2x128xf32>
    %cst_14 = arith.constant 0.000000e+00 : f32
    %41 = vector.broadcast %cst_14 : f32 to vector<2x128xf32>
    %42 = arith.maximumf %40, %41 : vector<2x128xf32>
    %43 = arith.truncf %42 : vector<2x128xf32> to vector<2x128xbf16>
    %c0_15 = arith.constant 0 : index
    %c0_16 = arith.constant 0 : index
    %44 = vector.load %arg4[%c0_15, %c0_16] : memref<512x768xbf16, #tpu.memory_space<vmem>>, vector<128x768xbf16>
    %cst_17 = arith.constant dense<0.000000e+00> : vector<2x768xf32>
    %45 = tpu.matmul %43, %44, %cst_17 {dimension_numbers = #tpu.dot_dimension_numbers<[1], [0], [0], [1], [0, 0, 1, 1], [], []>} : vector<2x128xbf16>, vector<128x768xbf16>, vector<2x768xf32> -> vector<2x768xf32>
    %46 = vector.broadcast %34 : vector<1x768xf32> to vector<2x768xf32>
    %47 = arith.addf %46, %45 : vector<2x768xf32>
    %48 = arith.truncf %29 : vector<2x128xf32> to vector<2x128xbf16>
    %c0_18 = arith.constant 0 : index
    %c0_19 = arith.constant 0 : index
    %49 = vector.load %arg2[%c0_18, %c0_19] : memref<128x128xbf16, #tpu.memory_space<vmem>>, vector<128x128xbf16>
    %cst_20 = arith.constant dense<0.000000e+00> : vector<2x128xf32>
    %50 = tpu.matmul %48, %49, %cst_20 {dimension_numbers = #tpu.dot_dimension_numbers<[1], [0], [0], [1], [0, 0, 1, 1], [], []>} : vector<2x128xbf16>, vector<128x128xbf16>, vector<2x128xf32> -> vector<2x128xf32>
    %c0_21 = arith.constant 0 : index
    %c0_22 = arith.constant 0 : index
    %51 = vector.load %arg3[%c0_21, %c0_22] : memref<1x128xf32, #tpu.memory_space<vmem>>, vector<1x128xf32>
    %52 = vector.broadcast %51 : vector<1x128xf32> to vector<2x128xf32>
    %53 = arith.addf %50, %52 : vector<2x128xf32>
    %cst_23 = arith.constant 0.000000e+00 : f32
    %54 = vector.broadcast %cst_23 : f32 to vector<2x128xf32>
    %55 = arith.maximumf %53, %54 : vector<2x128xf32>
    %56 = arith.truncf %55 : vector<2x128xf32> to vector<2x128xbf16>
    %c128 = arith.constant 128 : index
    %c0_24 = arith.constant 0 : index
    %57 = vector.load %arg4[%c128, %c0_24] : memref<512x768xbf16, #tpu.memory_space<vmem>>, vector<128x768xbf16>
    %cst_25 = arith.constant dense<0.000000e+00> : vector<2x768xf32>
    %58 = tpu.matmul %56, %57, %cst_25 {dimension_numbers = #tpu.dot_dimension_numbers<[1], [0], [0], [1], [0, 0, 1, 1], [], []>} : vector<2x128xbf16>, vector<128x768xbf16>, vector<2x768xf32> -> vector<2x768xf32>
    %59 = arith.addf %47, %58 : vector<2x768xf32>
    %60 = arith.truncf %31 : vector<2x128xf32> to vector<2x128xbf16>
    %c0_26 = arith.constant 0 : index
    %c0_27 = arith.constant 0 : index
    %61 = vector.load %arg2[%c0_26, %c0_27] : memref<128x128xbf16, #tpu.memory_space<vmem>>, vector<128x128xbf16>
    %cst_28 = arith.constant dense<0.000000e+00> : vector<2x128xf32>
    %62 = tpu.matmul %60, %61, %cst_28 {dimension_numbers = #tpu.dot_dimension_numbers<[1], [0], [0], [1], [0, 0, 1, 1], [], []>} : vector<2x128xbf16>, vector<128x128xbf16>, vector<2x128xf32> -> vector<2x128xf32>
    %c0_29 = arith.constant 0 : index
    %c0_30 = arith.constant 0 : index
    %63 = vector.load %arg3[%c0_29, %c0_30] : memref<1x128xf32, #tpu.memory_space<vmem>>, vector<1x128xf32>
    %64 = vector.broadcast %63 : vector<1x128xf32> to vector<2x128xf32>
    %65 = arith.addf %62, %64 : vector<2x128xf32>
    %cst_31 = arith.constant 0.000000e+00 : f32
    %66 = vector.broadcast %cst_31 : f32 to vector<2x128xf32>
    %67 = arith.maximumf %65, %66 : vector<2x128xf32>
    %68 = arith.truncf %67 : vector<2x128xf32> to vector<2x128xbf16>
    %c256 = arith.constant 256 : index
    %c0_32 = arith.constant 0 : index
    %69 = vector.load %arg4[%c256, %c0_32] : memref<512x768xbf16, #tpu.memory_space<vmem>>, vector<128x768xbf16>
    %cst_33 = arith.constant dense<0.000000e+00> : vector<2x768xf32>
    %70 = tpu.matmul %68, %69, %cst_33 {dimension_numbers = #tpu.dot_dimension_numbers<[1], [0], [0], [1], [0, 0, 1, 1], [], []>} : vector<2x128xbf16>, vector<128x768xbf16>, vector<2x768xf32> -> vector<2x768xf32>
    %71 = arith.addf %59, %70 : vector<2x768xf32>
    %72 = arith.truncf %33 : vector<2x128xf32> to vector<2x128xbf16>
    %c0_34 = arith.constant 0 : index
    %c0_35 = arith.constant 0 : index
    %73 = vector.load %arg2[%c0_34, %c0_35] : memref<128x128xbf16, #tpu.memory_space<vmem>>, vector<128x128xbf16>
    %cst_36 = arith.constant dense<0.000000e+00> : vector<2x128xf32>
    %74 = tpu.matmul %72, %73, %cst_36 {dimension_numbers = #tpu.dot_dimension_numbers<[1], [0], [0], [1], [0, 0, 1, 1], [], []>} : vector<2x128xbf16>, vector<128x128xbf16>, vector<2x128xf32> -> vector<2x128xf32>
    %c0_37 = arith.constant 0 : index
    %c0_38 = arith.constant 0 : index
    %75 = vector.load %arg3[%c0_37, %c0_38] : memref<1x128xf32, #tpu.memory_space<vmem>>, vector<1x128xf32>
    %76 = vector.broadcast %75 : vector<1x128xf32> to vector<2x128xf32>
    %77 = arith.addf %74, %76 : vector<2x128xf32>
    %cst_39 = arith.constant 0.000000e+00 : f32
    %78 = vector.broadcast %cst_39 : f32 to vector<2x128xf32>
    %79 = arith.maximumf %77, %78 : vector<2x128xf32>
    %80 = arith.truncf %79 : vector<2x128xf32> to vector<2x128xbf16>
    %c384 = arith.constant 384 : index
    %c0_40 = arith.constant 0 : index
    %81 = vector.load %arg4[%c384, %c0_40] : memref<512x768xbf16, #tpu.memory_space<vmem>>, vector<128x768xbf16>
    %cst_41 = arith.constant dense<0.000000e+00> : vector<2x768xf32>
    %82 = tpu.matmul %80, %81, %cst_41 {dimension_numbers = #tpu.dot_dimension_numbers<[1], [0], [0], [1], [0, 0, 1, 1], [], []>} : vector<2x128xbf16>, vector<128x768xbf16>, vector<2x768xf32> -> vector<2x768xf32>
    %83 = arith.addf %71, %82 : vector<2x768xf32>
    %cst_42 = arith.constant 0.000000e+00 : f32
    %84 = vector.broadcast %cst_42 : f32 to vector<2x768xf32>
    %85 = arith.maximumf %83, %84 : vector<2x768xf32>
    %86 = arith.truncf %85 : vector<2x768xf32> to vector<2x768xbf16>
    %c0_43 = arith.constant 0 : index
    %c0_44 = arith.constant 0 : index
    %87 = vector.load %arg6[%c0_43, %c0_44] : memref<768x128xbf16, #tpu.memory_space<vmem>>, vector<768x128xbf16>
    %cst_45 = arith.constant dense<0.000000e+00> : vector<2x128xf32>
    %88 = tpu.matmul %86, %87, %cst_45 {dimension_numbers = #tpu.dot_dimension_numbers<[1], [0], [0], [1], [0, 0, 1, 1], [], []>} : vector<2x768xbf16>, vector<768x128xbf16>, vector<2x128xf32> -> vector<2x128xf32>
    %c0_46 = arith.constant 0 : index
    %c0_47 = arith.constant 0 : index
    %89 = vector.load %arg7[%c0_46, %c0_47] : memref<1x128xf32, #tpu.memory_space<vmem>>, vector<1x128xf32>
    %90 = vector.broadcast %89 : vector<1x128xf32> to vector<2x128xf32>
    %91 = arith.addf %88, %90 : vector<2x128xf32>
    %c0_48 = arith.constant 0 : index
    %c0_49 = arith.constant 0 : index
    %92 = vector.load %arg8[%c0_48, %c0_49] : memref<2x128xf32, #tpu.memory_space<vmem>>, vector<2x128xf32>
    tpu.vector_store %arg8[%c0_48, %c0_49], %91 {strides = array<i32>} : memref<2x128xf32, #tpu.memory_space<vmem>>, vector<2x128xf32>,
    return
  }
  func.func @transform_0(%arg0: i32) -> (i32, i32, i32, i32) {
    %c0_i32 = arith.constant 0 : i32
    %c0_i32_0 = arith.constant 0 : i32
    %c0_i32_1 = arith.constant 0 : i32
    %c0_i32_2 = arith.constant 0 : i32
    return %arg0, %c0_i32, %c0_i32_0, %c0_i32_1 : i32, i32, i32, i32
  }
  func.func @transform_1(%arg0: i32) -> (i32, i32) {
    %c0_i32 = arith.constant 0 : i32
    %c0_i32_0 = arith.constant 0 : i32
    %c0_i32_1 = arith.constant 0 : i32
    return %c0_i32, %c0_i32_0 : i32, i32
  }
  func.func @transform_2(%arg0: i32) -> (i32, i32) {
    %c0_i32 = arith.constant 0 : i32
    %c0_i32_0 = arith.constant 0 : i32
    %c0_i32_1 = arith.constant 0 : i32
    return %c0_i32, %c0_i32_0 : i32, i32
  }
  func.func @transform_3(%arg0: i32) -> (i32, i32) {
    %c0_i32 = arith.constant 0 : i32
    %c0_i32_0 = arith.constant 0 : i32
    %c0_i32_1 = arith.constant 0 : i32
    return %c0_i32, %c0_i32_0 : i32, i32
  }
  func.func @transform_4(%arg0: i32) -> (i32, i32) {
    %c0_i32 = arith.constant 0 : i32
    %c0_i32_0 = arith.constant 0 : i32
    %c0_i32_1 = arith.constant 0 : i32
    return %c0_i32, %c0_i32_0 : i32, i32
  }
  func.func @transform_5(%arg0: i32) -> (i32, i32) {
    %c0_i32 = arith.constant 0 : i32
    %c0_i32_0 = arith.constant 0 : i32
    %c0_i32_1 = arith.constant 0 : i32
    return %c0_i32, %c0_i32_0 : i32, i32
  }
  func.func @transform_6(%arg0: i32) -> (i32, i32) {
    %c0_i32 = arith.constant 0 : i32
    %c0_i32_0 = arith.constant 0 : i32
    %c0_i32_1 = arith.constant 0 : i32
    return %c0_i32, %c0_i32_0 : i32, i32
  }
  func.func @transform_7(%arg0: i32) -> (i32, i32) {
    %c0_i32 = arith.constant 0 : i32
    %c0_i32_0 = arith.constant 0 : i32
    return %arg0, %c0_i32 : i32, i32
  }
}

</mosaic_0001>

<bundles_post_ra>
// kernel: aux_head_forward.1
= control target key start
LH: loop header
LB: loop body
LE: loop exit
PB: predicated region body
PF: predicated region fallthrough
CT: control target
= control target key end

     0   :  { %12 = vsyncpa [#allocation3], 0  ;;  %s3960_s0 = inlined_call_operand.hbm [shape: f32[2,8,8,128], index: 0, kind: input, shape index: {}]   ;;  %s3961_s1 = inlined_call_operand.hbm [shape: bf16[128,128], index: 1, kind: input, shape index: {}]   ;;  %s3962_s2 = inlined_call_operand.vmem [shape: f32[1,128], index: 2, kind: input, shape index: {}]   ;;  %s3963_s3 = inlined_call_operand.hbm [shape: bf16[512,768], index: 3, kind: input, shape index: {}]   ;;  %s3964_s4 = inlined_call_operand.hbm [shape: f32[1,768], index: 4, kind: input, shape index: {}]   ;;  %s3965_s5 = inlined_call_operand.hbm [shape: bf16[768,128], index: 5, kind: input, shape index: {}]   ;;  %s3966_s6 = inlined_call_operand.vmem [shape: f32[1,128], index: 6, kind: input, shape index: {}]   ;;  %s3967_s7 = inlined_call_operand.hbm [shape: f32[2,128], index: 7, kind: output, shape index: {}]  }
   0x1   :  { %13 = vsyncpa [#allocation6], 0 }
   0x2   :  { %14 = vsyncpa [#allocation9], 0 }
   0x3   :  { %15 = vsyncpa [#allocation4], 0  ;;  %s3653_s24 = smov [#allocation5]  }
   0x4   :  { %s33_s25 = sshll.u32 %s3653_s24, 4  ;;  %s34_s25 = int_to_ptr.vmem [resolvable:$true] %s33_s25 }
   0x5   :  { %s3533_s26 = scalar_lea.vmem %s34_s25, 1024  ;;  %p3538_p1 = scmp.lt.s32.totalorder %s34_s25, %s34_s25 }
   0x6   :  { %p3534_p0 = scmp.ne.s32.totalorder %s34_s25, %s3533_s26  ;;  %p3539_p2 = scmp.lt.s32.totalorder %s3533_s26, %s3533_s26 }
   0x8   :  { %p3540_p3 = por %p3539_p2, %p3538_p1 }
   0xa   :  { %p3541_p4 = pnand %p3540_p3, %p3534_p0 }
   0xc   :  { %3544 = shalt.err (!%p3541_p4)
}
   0xd   :  { %s3654_s27 = smov 64   ;;  %s3655_s28 = smov 4  }
   0xe   :  { %39 = dma.hbm_to_vmem [thread:$0]  %s3961_s1, 1024, %s34_s25, [#allocation6], %s3654_s27, %s3654_s27, %s3655_s28  }
   0xf   :  { %s3656_s8 = smov [#allocation8]   ;;  %s3657_s10 = smov [#allocation2]  }
  0x10   :  { %s60_s9 = sshll.u32 %s3656_s8, 4  ;;  %s21_s11 = sshll.u32 %s3657_s10, 4  ;;  %s61_s9 = int_to_ptr.vmem [resolvable:$true] %s60_s9  ;;  %s22_s11 = int_to_ptr.vmem [resolvable:$true] %s21_s11 }
  0x11   :  { %s3553_s12 = scalar_lea.vmem %s61_s9, 96  ;;  %p3558_p6 = scmp.lt.s32.totalorder %s61_s9, %s61_s9 }
  0x12   :  { %p3554_p5 = scmp.ne.s32.totalorder %s61_s9, %s3553_s12  ;;  %p3559_p7 = scmp.lt.s32.totalorder %s3553_s12, %s3553_s12 }
  0x14   :  { %p3560_p8 = por %p3559_p7, %p3558_p6 }
  0x16   :  { %p3561_p9 = pnand %p3560_p8, %p3554_p5 }
  0x18   :  { %3564 = shalt.err (!%p3561_p9)
}
  0x19   :  { %63 = dma.hbm_to_vmem [thread:$0]  %s3964_s4, 96, %s61_s9, [#allocation9]  }
  0x1a   :  { %s3573_s15 = scalar_lea.vmem %s22_s11, 2048  ;;  %p3578_p11 = scmp.lt.s32.totalorder %s22_s11, %s22_s11 }
  0x1b   :  { %p3574_p10 = scmp.ne.s32.totalorder %s22_s11, %s3573_s15  ;;  %p3579_p12 = scmp.lt.s32.totalorder %s3573_s15, %s3573_s15 }
  0x1d   :  { %p3580_p13 = por %p3579_p12, %p3578_p11 }
  0x1f   :  { %p3581_p0 = pnand %p3580_p13, %p3574_p10 }
  0x21   :  { %3584 = shalt.err (!%p3581_p0)
}
  0x22   :  { %s3658_s1 = smov 128   ;;  %s3659_s16 = smov 8  }
  0x23   :  { %27 = dma.hbm_to_vmem [thread:$0]  %s3960_s0, 2048, %s22_s11, [#allocation3], %s3658_s1, %s3658_s1, %s3659_s16  }
  0x24   :  { %s3660_s19 = smov [#allocation7]  }
  0x25   :  { %s47_s20 = sshll.u32 %s3660_s19, 4  ;;  %s48_s20 = int_to_ptr.vmem [resolvable:$true] %s47_s20 }
  0x26   :  { %s3593_s21 = scalar_lea.vmem %s48_s20, 24576  ;;  %p3598_p2 = scmp.lt.s32.totalorder %s48_s20, %s48_s20 }
  0x27   :  { %p3594_p1 = scmp.ne.s32.totalorder %s48_s20, %s3593_s21  ;;  %p3599_p3 = scmp.lt.s32.totalorder %s3593_s21, %s3593_s21 }
  0x29   :  { %p3600_p4 = por %p3599_p3, %p3598_p2 }
  0x2b   :  { %p3601_p5 = pnand %p3600_p4, %p3594_p1 }
  0x2d   :  { %3604 = shalt.err (!%p3601_p5)
}
  0x2e   :  { %s3661_s4 = smov 384   ;;  %s3662_s22 = smov 24  }
  0x2f   :  { %53 = dma.hbm_to_vmem [thread:$0]  %s3963_s3, 24576, %s48_s20, [#allocation6], %s3661_s4, %s3661_s4, %s3662_s22  }
  0x30   :  { %s3663_s25 = smov [#allocation10]  }
  0x31   :  { %s69_s26 = sshll.u32 %s3663_s25, 4  ;;  %s70_s26 = int_to_ptr.vmem [resolvable:$true] %s69_s26 }
  0x32   :  { %s3613_s0 = scalar_lea.vmem %s70_s26, 6144  ;;  %p3618_p7 = scmp.lt.s32.totalorder %s70_s26, %s70_s26 }
  0x33   :  { %p3614_p6 = scmp.ne.s32.totalorder %s70_s26, %s3613_s0  ;;  %p3619_p8 = scmp.lt.s32.totalorder %s3613_s0, %s3613_s0 }
  0x35   :  { %p3620_p9 = por %p3619_p8, %p3618_p7 }
  0x37   :  { %p3621_p10 = pnand %p3620_p9, %p3614_p6 }
  0x39   :  { %3624 = shalt.err (!%p3621_p10)
}
  0x3a   :  { %75 = dma.hbm_to_vmem [thread:$0]  %s3965_s5, 6144, %s70_s26, [#allocation9], %s3654_s27, %s3654_s27, %s3655_s28  }
  0x3b   :  { %3645 = dma.done.wait [#allocation3], 2048  }
  0x3c   :  { %3646 = vsyncadd [#allocation3], 4294965248 }
  0x3d   :  { %3647 = dma.done.wait [#allocation6], 25600  }
  0x3e   :  { %3648 = vsyncadd [#allocation6], 4294941696 }
  0x3f   :  { %3649 = dma.done.wait [#allocation9], 6240  }
  0x40   :  { %3650 = vsyncadd [#allocation9], 4294961056  ;;  %v3664_v0 = vmov 0.0   ;;  %vm3665_vm0 = vmmov 0   ;;  %v3732_v1 = vld [vmem:[#allocation5 + $0x38] sm:$0xff]   ;;  %v3735_v2 = vld [vmem:[#allocation5 + $0x30] sm:$0xff]  }
  0x41   :  { %3078 = vmatprep.subr.bf16.mxu0 %v3664_v0  ;;  %3094 = vmatprep.mubr.msk.bf16.mxu0 %vm3665_vm0, %v3664_v0  ;;  %v3739_v3 = vld [vmem:[#allocation5 + $0x28] sm:$0xff]   ;;  %v94_v4 = vld [vmem:[#allocation2] sm:$0xff]  ;;  %v96_v6 = vld [vmem:[#allocation2 + $0x10] sm:$0xff]  ;;  %vm140_vm1 = vcmask 1044480   ;;  %vm239_vm2 = vcmask 1041409   ;;  %s3667_s28 = smov [#allocation11]  }
  0x42   :  { %3079 = vmatpush3.bf16.msra.mxu0 %v3732_v1  ;;  %v95_v5 = vld [vmem:[#allocation2 + $0x8] sm:$0xff]  ;;  %v3742_v7 = vld [vmem:[#allocation5 + $0x20] sm:$0xff]   ;;  %v97_v8 = vld [vmem:[#allocation2 + $0x18] sm:$0xff]  ;;  %v110_v10 = vmax.f32 %v94_v4, 0.0  ;;  %v112_v12 = vmax.f32 %v96_v6, 0.0  ;;  %s2715_s8 = sshll.u32 %s3667_s28, 4  ;;  %s2716_s8 = int_to_ptr.vmem [resolvable:$true] %s2715_s8 }
  0x43   :  { %3080 = vmatprep.subr.bf16.mxu0 %v3664_v0  ;;  %v98_v9 = vld [vmem:[#allocation2 + $0x20] sm:$0xff]  ;;  %v111_v11 = vmax.f32 %v95_v5, 0.0  ;;  %v103_v14 = vld [vmem:[#allocation2 + $0x48] sm:$0xff]  ;;  %v104_v15 = vld [vmem:[#allocation2 + $0x50] sm:$0xff]  ;;  %v113_v16 = vmax.f32 %v97_v8, 0.0  ;;  %s3625_s9 = scalar_lea.vmem %s2716_s8, 32  ;;  %p3630_p12 = scmp.lt.s32.totalorder %s2716_s8, %s2716_s8 }
  0x44   :  { %v102_v13 = vld [vmem:[#allocation2 + $0x40] sm:$0xff]  ;;  %v114_v17 = vmax.f32 %v98_v9, 0.0  ;;  %v105_v18 = vld [vmem:[#allocation2 + $0x58] sm:$0xff]  ;;  %v119_v21 = vmax.f32 %v103_v14, 0.0  ;;  %v120_v22 = vmax.f32 %v104_v15, 0.0  ;;  %v3757_v36 = vld [vmem:[#allocation5 + $0x10] sm:$0xff]   ;;  %p3626_p11 = scmp.ne.s32.totalorder %s2716_s8, %s3625_s9  ;;  %p3631_p13 = scmp.lt.s32.totalorder %s3625_s9, %s3625_s9 }
  0x45   :  { %v106_v19 = vld [vmem:[#allocation2 + $0x60] sm:$0xff]  ;;  %v118_v20 = vmax.f32 %v102_v13, 0.0  ;;  %v128_v23 = vadd.f32 %v111_v11, %v110_v10  ;;  %v121_v24 = vmax.f32 %v105_v18, 0.0  ;;  %v3181_v29 = vld [vmem:[#allocation7 + $0x154] ss:$24 sps:$4 sm:$0xff]   ;;  %v3749_v30 = vld [vmem:[#allocation5 + $0x18] sm:$0xff]  }
  0x46   :  { %3081 = vmatpush3.bf16.msra.mxu0 %v3735_v2  ;;  %v122_v25 = vmax.f32 %v106_v19, 0.0  ;;  %v3746_v26 = vadd.f32 %v114_v17, %v113_v16  ;;  %v3186_v32 = vld [vmem:[#allocation7 + $0x150] ss:$24 sps:$4 sm:$0xff]   ;;  %621 = vmatprep.subr.bf16.mxu1 %v3181_v29  ;;  %v3187_v35 = vld [vmem:[#allocation7 + $0x124] ss:$24 sps:$4 sm:$0xff]   ;;  %p3632_p0 = por %p3631_p13, %p3630_p12 }
  0x47   :  { %3082 = vmatprep.subr.bf16.mxu0 %v3664_v0  ;;  %v129_v27 = vadd.f32 %v119_v21, %v118_v20  ;;  %v130_v28 = vadd.f32 %v128_v23, %v112_v12  ;;  %622 = vmatpush1.bf16.msra.mxu1 %v3186_v32  ;;  %v3192_v39 = vld [vmem:[#allocation7 + $0x120] ss:$24 sps:$4 sm:$0xff]   ;;  %v3193_v41 = vld [vmem:[#allocation7 + $0xf4] ss:$24 sps:$4 sm:$0xff]   ;;  %v3198_v45 = vld [vmem:[#allocation7 + $0xf0] ss:$24 sps:$4 sm:$0xff]  }
  0x48   :  { %v3751_v31 = vadd.f32 %v122_v25, %v121_v24  ;;  %623 = vmatprep.subr.bf16.mxu1 %v3187_v35  ;;  %v3199_v46 = vld [vmem:[#allocation7 + $0xc4] ss:$24 sps:$4 sm:$0xff]   ;;  %v3769_v47 = vld [vmem:[#allocation5 + $0x8] sm:$0xff]   ;;  %v3204_v52 = vld [vmem:[#allocation7 + $0xc0] ss:$24 sps:$4 sm:$0xff]   ;;  %v3666_v35 = vmov 0   ;;  %p3633_p1 = pnand %p3632_p0, %p3626_p11 }
  0x49   :  { %v131_v33 = vadd.f32 %v129_v27, %v120_v22  ;;  %v3755_v34 = vadd.f32 %v130_v28, %v3746_v26  ;;  %v3205_v53 = vld [vmem:[#allocation7 + $0x94] ss:$24 sps:$4 sm:$0xff]   ;;  %v3773_v54 = vld [vmem:[#allocation5] sm:$0xff]   ;;  %v3210_v60 = vld [vmem:[#allocation7 + $0x90] ss:$24 sps:$4 sm:$0xff]   ;;  %653 = vmatprep.mubr.bf16.mxu1 %v3666_v35 }
  0x4a   :  { %3083 = vmatpush3.bf16.msra.mxu0 %v3739_v3  ;;  %v3185_v57 = vld [vmem:[#allocation7 + $0x15c] ss:$24 sps:$4 sm:$0xff]   ;;  %v3216_v4 = vld [vmem:[#allocation7 + $0x60] ss:$24 sps:$4 sm:$0xff]   ;;  %v3222_v11 = vld [vmem:[#allocation7 + $0x30] ss:$24 sps:$4 sm:$0xff]  }
  0x4b   :  { %3084 = vmatprep.subr.bf16.mxu0 %v3664_v0  ;;  %v3760_v37 = vadd.f32 %v131_v33, %v3751_v31  ;;  %v141_v38 = vsel %vm140_vm1, %v3755_v34, 0.0  ;;  %624 = vmatpush1.bf16.msra.mxu1 %v3192_v39  ;;  %v3211_v61 = vld [vmem:[#allocation7 + $0x64] ss:$24 sps:$4 sm:$0xff]   ;;  %v3217_v5 = vld [vmem:[#allocation7 + $0x34] ss:$24 sps:$4 sm:$0xff]  }
  0x4c   :  { %v142_v40 = vrot.slane %v141_v38, 4  ;;  %625 = vmatprep.subr.bf16.mxu1 %v3193_v41  ;;  %v3183_v10 = vld [vmem:[#allocation7 + $0x158] ss:$24 sps:$4 sm:$0xff]   ;;  %v3191_v12 = vld [vmem:[#allocation7 + $0x12c] ss:$24 sps:$4 sm:$0xff]  }
  0x4d   :  { %v148_v42 = vsel %vm140_vm1, %v3760_v37, 0.0  ;;  %v3189_v15 = vld [vmem:[#allocation7 + $0x128] ss:$24 sps:$4 sm:$0xff]   ;;  %v3197_v16 = vld [vmem:[#allocation7 + $0xfc] ss:$24 sps:$4 sm:$0xff]   ;;  %v158_v39 = vrot.slane %v3760_v37, 3 }
  0x4e   :  { %3085 = vmatpush3.bf16.msra.mxu0 %v3742_v7  ;;  %v143_v43 = vadd.f32 %v142_v40, %v141_v38  ;;  %v149_v44 = vrot.slane %v148_v42, 4  ;;  %v3195_v17 = vld [vmem:[#allocation7 + $0xf8] ss:$24 sps:$4 sm:$0xff]   ;;  %v3203_v18 = vld [vmem:[#allocation7 + $0xcc] ss:$24 sps:$4 sm:$0xff]   ;;  %v157_v38 = vrot.slane %v3755_v34, 3 }
  0x4f   :  { %3086 = vmatprep.subr.bf16.mxu0 %v3664_v0  ;;  %626 = vmatpush1.bf16.msra.mxu1 %v3198_v45  ;;  %v3201_v19 = vld [vmem:[#allocation7 + $0xc8] ss:$24 sps:$4 sm:$0xff]   ;;  %v3209_v20 = vld [vmem:[#allocation7 + $0x9c] ss:$24 sps:$4 sm:$0xff]   ;;  %v3207_v21 = vld [vmem:[#allocation7 + $0x98] ss:$24 sps:$4 sm:$0xff]  }
  0x50   :  { %v144_v48 = vrot.slane %v143_v43, 2  ;;  %v150_v49 = vadd.f32 %v149_v44, %v148_v42  ;;  %627 = vmatprep.subr.bf16.mxu1 %v3199_v46  ;;  %v3215_v22 = vld [vmem:[#allocation7 + $0x6c] ss:$24 sps:$4 sm:$0xff]   ;;  %v3213_v23 = vld [vmem:[#allocation7 + $0x68] ss:$24 sps:$4 sm:$0xff]   ;;  %v161_v40 = vsel %vm140_vm1, %v157_v38, 0.0 }
  0x51   :  { %v3221_v24 = vld [vmem:[#allocation7 + $0x3c] ss:$24 sps:$4 sm:$0xff]   ;;  %v3219_v25 = vld [vmem:[#allocation7 + $0x38] ss:$24 sps:$4 sm:$0xff]   ;;  %v3227_v28 = vld [vmem:[#allocation7 + $0xc] ss:$24 sps:$4 sm:$0xff]  }
  0x52   :  { %3087 = vmatpush3.bf16.msra.mxu0 %v3749_v30  ;;  %v145_v50 = vadd.f32 %v144_v48, %v143_v43  ;;  %v151_v51 = vrot.slane %v150_v49, 2  ;;  %v3223_v27 = vld [vmem:[#allocation7 + $0x4] ss:$24 sps:$4 sm:$0xff]   ;;  %v3225_v29 = vld [vmem:[#allocation7 + $0x8] ss:$24 sps:$4 sm:$0xff]   ;;  %v168_v41 = vsel %vm140_vm1, %v158_v39, 0.0 }
  0x53   :  { %3088 = vmatprep.subr.bf16.mxu0 %v3664_v0  ;;  %628 = vmatpush1.bf16.msra.mxu1 %v3204_v52  ;;  %v3228_v32 = vld [vmem:[#allocation7] ss:$24 sps:$4 sm:$0xff]   ;;  %v3231_v33 = vld [vmem:[#allocation7 + $0x164] ss:$24 sps:$4 sm:$0xff]   ;;  %v162_v42 = vrot.slane %v161_v40, 4  ;;  %v169_v43 = vrot.slane %v168_v41, 4 }
  0x54   :  { %v146_v55 = vrot.slane %v145_v50, 1  ;;  %v152_v56 = vadd.f32 %v151_v51, %v150_v49  ;;  %629 = vmatprep.subr.bf16.mxu1 %v3205_v53  ;;  %v3274_v38 = vld [vmem:[#allocation7 + $0x248] ss:$24 sps:$4 sm:$0xff]   ;;  %v3279_v39 = vld [vmem:[#allocation7 + $0x214] ss:$24 sps:$4 sm:$0xff]  }
  0x55   :  { %v163_v44 = vadd.f32 %v162_v42, %v161_v40  ;;  %v170_v45 = vadd.f32 %v169_v43, %v168_v41  ;;  %v3282_v40 = vld [vmem:[#allocation7 + $0x21c] ss:$24 sps:$4 sm:$0xff]   ;;  %v3277_v41 = vld [vmem:[#allocation7 + $0x210] ss:$24 sps:$4 sm:$0xff]  }
  0x56   :  { %3089 = vmatpush3.bf16.msra.mxu0 %v3757_v36  ;;  %v147_v58 = vadd.f32 %v146_v55, %v145_v50  ;;  %v153_v59 = vrot.slane %v152_v56, 1  ;;  %v3280_v42 = vld [vmem:[#allocation7 + $0x218] ss:$24 sps:$4 sm:$0xff]   ;;  %v3285_v43 = vld [vmem:[#allocation7 + $0x1e4] ss:$24 sps:$4 sm:$0xff]  }
  0x57   :  { %3090 = vmatprep.subr.bf16.mxu0 %v3664_v0  ;;  %630 = vmatpush1.bf16.msra.mxu1 %v3210_v60  ;;  %v164_v46 = vrot.slane %v163_v44, 2  ;;  %v171_v48 = vrot.slane %v170_v45, 2 }
  0x58   :  { %v154_v62 = vadd.f32 %v153_v59, %v152_v56  ;;  %v210_v63 = vpack.c.bf16 %v147_v58, %v147_v58  ;;  %631 = vmatprep.subr.bf16.mxu1 %v3211_v61  ;;  %v3789_v59 = vld [vmem:[%s3962_s2] ss:$0 sm:$0xff] }
  0x59   :  { %v165_v49 = vadd.f32 %v164_v46, %v163_v44  ;;  %v172_v50 = vadd.f32 %v171_v48, %v170_v45  ;;  %v3288_v44 = vld [vmem:[#allocation7 + $0x1ec] ss:$24 sps:$4 sm:$0xff]   ;;  %v3283_v45 = vld [vmem:[#allocation7 + $0x1e0] ss:$24 sps:$4 sm:$0xff]  }
  0x5a   :  { %3091 = vmatpush3.bf16.msra.mxu0 %v3769_v47  ;;  %v211_v6 = vpack.c.bf16 %v154_v62, %v154_v62  ;;  %v237_v8 = vunpack.c.l.b16 %v210_v63  ;;  %v3286_v46 = vld [vmem:[#allocation7 + $0x1e8] ss:$24 sps:$4 sm:$0xff]   ;;  %v3291_v48 = vld [vmem:[#allocation7 + $0x1b4] ss:$24 sps:$4 sm:$0xff]  }
  0x5b   :  { %3092 = vmatprep.subr.bf16.mxu0 %v3664_v0  ;;  %632 = vmatpush1.bf16.msra.mxu1 %v3216_v4  ;;  %v166_v51 = vrot.slane %v165_v49, 1  ;;  %v173_v52 = vrot.slane %v172_v50, 1 }
  0x5c   :  { %v238_v9 = vunpack.c.l.b16 %v211_v6  ;;  %633 = vmatprep.subr.bf16.mxu1 %v3217_v5  ;;  %v3229_v5 = vld [vmem:[#allocation7 + $0x160] ss:$24 sps:$4 sm:$0xff]  }
  0x5d   :  { %v167_v53 = vadd.f32 %v166_v51, %v165_v49  ;;  %v174_v55 = vadd.f32 %v173_v52, %v172_v50  ;;  %v3294_v49 = vld [vmem:[#allocation7 + $0x1bc] ss:$24 sps:$4 sm:$0xff]   ;;  %v3289_v50 = vld [vmem:[#allocation7 + $0x1b0] ss:$24 sps:$4 sm:$0xff]  }
  0x5e   :  { %3093 = vmatpush3.bf16.msra.mxu0 %v3773_v54  ;;  %v240_v13 = vsel %vm239_vm2, %v238_v9, %v237_v8  ;;  %v3234_v8 = vld [vmem:[#allocation7 + $0x134] ss:$24 sps:$4 sm:$0xff]   ;;  %v3292_v51 = vld [vmem:[#allocation7 + $0x1b8] ss:$24 sps:$4 sm:$0xff]   ;;  %v3297_v52 = vld [vmem:[#allocation7 + $0x184] ss:$24 sps:$4 sm:$0xff]  }
  0x5f   :  { %662 = vmatprep.subr.bf16.mxu0 %v3185_v57  ;;  %v241_v14 = vpack.c.b16 %v240_v13, %v240_v13  ;;  %634 = vmatpush1.bf16.msra.mxu1 %v3222_v11  ;;  %v781_v56 = vpack.c.bf16 %v167_v53, %v167_v53  ;;  %v782_v34 = vpack.c.bf16 %v174_v55, %v174_v55  ;;  %v3237_v11 = vld [vmem:[#allocation7 + $0x104] ss:$24 sps:$4 sm:$0xff]   ;;  %v3240_v13 = vld [vmem:[#allocation7 + $0xd4] ss:$24 sps:$4 sm:$0xff]   ;;  %v3295_v55 = vld [vmem:[#allocation7 + $0x180] ss:$24 sps:$4 sm:$0xff]  }
  0x60   :  { %635 = vmatprep.subr.bf16.mxu1 %v3223_v27  ;;  %v3265_v27 = vld [vmem:[#allocation7 + $0x270] ss:$24 sps:$4 sm:$0xff]   ;;  %v3300_v53 = vld [vmem:[#allocation7 + $0x18c] ss:$24 sps:$4 sm:$0xff]  }
  0x61   :  { %3095 = vmatmul.mubr.bf16.vlgmr.msra.gmra.mxu0 %v241_v14  ;;  %v785_v57 = vunpack.c.l.b16 %v781_v56  ;;  %v786_v37 = vunpack.c.l.b16 %v782_v34  ;;  %v3243_v14 = vld [vmem:[#allocation7 + $0xa4] ss:$24 sps:$4 sm:$0xff]   ;;  %v3298_v56 = vld [vmem:[#allocation7 + $0x188] ss:$24 sps:$4 sm:$0xff]  }
  0x62   :  { %663 = vmatpush1.bf16.msra.mxu0 %v3183_v10  ;;  %694 = vmatprep.mubr.bf16.mxu0 %v3666_v35  ;;  %v3232_v10 = vld [vmem:[#allocation7 + $0x130] ss:$24 sps:$4 sm:$0xff]   ;;  %v3303_v34 = vld [vmem:[#allocation7 + $0x2e4] ss:$24 sps:$4 sm:$0xff]  }
  0x63   :  { %664 = vmatprep.subr.bf16.mxu0 %v3191_v12  ;;  %636 = vmatpush1.bf16.msra.mxu1 %v3228_v32  ;;  %v787_v58 = vsel %vm239_vm2, %v786_v37, %v785_v57  ;;  %v3235_v12 = vld [vmem:[#allocation7 + $0x100] ss:$24 sps:$4 sm:$0xff]   ;;  %v3276_v32 = vld [vmem:[#allocation7 + $0x24c] ss:$24 sps:$4 sm:$0xff]  }
  0x64   :  { %703 = vmatprep.subr.bf16.mxu1 %v3231_v33  ;;  %v3271_v33 = vld [vmem:[#allocation7 + $0x240] ss:$24 sps:$4 sm:$0xff]  }
  0x66   :  { %665 = vmatpush1.bf16.msra.mxu0 %v3189_v15  ;;  %v3241_v15 = vld [vmem:[#allocation7 + $0xa0] ss:$24 sps:$4 sm:$0xff]  }
  0x67   :  { %666 = vmatprep.subr.bf16.mxu0 %v3197_v16  ;;  %v3244_v16 = vld [vmem:[#allocation7 + $0x70] ss:$24 sps:$4 sm:$0xff]  }
  0x6a   :  { %667 = vmatpush1.bf16.msra.mxu0 %v3195_v17  ;;  %v3247_v17 = vld [vmem:[#allocation7 + $0x40] ss:$24 sps:$4 sm:$0xff]  }
  0x6b   :  { %668 = vmatprep.subr.bf16.mxu0 %v3203_v18  ;;  %v3250_v18 = vld [vmem:[#allocation7 + $0x10] ss:$24 sps:$4 sm:$0xff]  }
  0x6e   :  { %669 = vmatpush1.bf16.msra.mxu0 %v3201_v19  ;;  %v3255_v19 = vld [vmem:[#allocation7 + $0x2d4] ss:$24 sps:$4 sm:$0xff]  }
  0x6f   :  { %670 = vmatprep.subr.bf16.mxu0 %v3209_v20  ;;  %v3256_v20 = vld [vmem:[#allocation7 + $0x2d8] ss:$24 sps:$4 sm:$0xff]  }
  0x72   :  { %671 = vmatpush1.bf16.msra.mxu0 %v3207_v21  ;;  %v3258_v21 = vld [vmem:[#allocation7 + $0x2dc] ss:$24 sps:$4 sm:$0xff]  }
  0x73   :  { %672 = vmatprep.subr.bf16.mxu0 %v3215_v22  ;;  %v3259_v22 = vld [vmem:[#allocation7 + $0x2a0] ss:$24 sps:$4 sm:$0xff]  }
  0x76   :  { %673 = vmatpush1.bf16.msra.mxu0 %v3213_v23  ;;  %v3264_v23 = vld [vmem:[#allocation7 + $0x2ac] ss:$24 sps:$4 sm:$0xff]  }
  0x77   :  { %674 = vmatprep.subr.bf16.mxu0 %v3221_v24  ;;  %v3262_v24 = vld [vmem:[#allocation7 + $0x2a8] ss:$24 sps:$4 sm:$0xff]  }
  0x7a   :  { %675 = vmatpush1.bf16.msra.mxu0 %v3219_v25  ;;  %v3270_v25 = vld [vmem:[#allocation7 + $0x27c] ss:$24 sps:$4 sm:$0xff]  }
  0x7b   :  { %676 = vmatprep.subr.bf16.mxu0 %v3227_v28  ;;  %v3268_v28 = vld [vmem:[#allocation7 + $0x278] ss:$24 sps:$4 sm:$0xff]  }
  0x7e   :  { %677 = vmatpush1.bf16.msra.mxu0 %v3225_v29  ;;  %v3273_v29 = vld [vmem:[#allocation7 + $0x244] ss:$24 sps:$4 sm:$0xff]  }
  0x7f   :  { %3098 = vmatprep.subr.bf16.mxu0 %v3664_v0 }
 0x121   :  { %v325_v60 = vpop.f32.mrf.mxu0 }
 0x122   :  { %v326_v61 = vadd.f32 %v3789_v59, %v325_v60 }
 0x123   :  { %v3096_v62 = vpop.f32.mrf.mxu0 }
 0x124   :  { %v331_v63 = vmax.f32 %v326_v61, 0.0 }
 0x125   :  { %v328_v4 = vpop.f32.mrf.mxu0 }
 0x126   :  { %v332_v6 = vpack.c.bf16 %v331_v63, %v331_v63 }
 0x127   :  { %v3097_v9 = vpop.f32.mrf.mxu0 }
 0x128   :  { %654 = vmatmul.mubr.bf16.vlgmr.msra.gmra.mxu1 %v332_v6  ;;  %695 = vmatmul.mubr.bf16.vlgmr.msra.gmra.mxu0 %v332_v6 }
 0x129   :  { %704 = vmatpush1.bf16.msra.mxu1 %v3229_v5  ;;  %3099 = vmatpush3.bf16.msra.mxu0 %v3732_v1  ;;  %v3238_v1 = vld [vmem:[#allocation7 + $0xd0] ss:$24 sps:$4 sm:$0xff]  }
 0x12a   :  { %705 = vmatprep.subr.bf16.mxu1 %v3234_v8  ;;  %3100 = vmatprep.subr.bf16.mxu0 %v3664_v0  ;;  %v99_v5 = vld [vmem:[#allocation2 + $0x28] sm:$0xff] }
 0x12b   :  { %735 = vmatprep.mubr.bf16.mxu1 %v3666_v35  ;;  %3114 = vmatprep.mubr.msk.bf16.mxu0 %vm3665_vm0, %v3664_v0  ;;  %v115_v8 = vmax.f32 %v99_v5, 0.0  ;;  %v3859_v5 = vld [vmem:[#allocation5 + $0x18] sm:$0xff]  }
 0x12d   :  { %706 = vmatpush1.bf16.msra.mxu1 %v3232_v10  ;;  %3101 = vmatpush3.bf16.msra.mxu0 %v3735_v2  ;;  %v3246_v2 = vld [vmem:[#allocation7 + $0x74] ss:$24 sps:$4 sm:$0xff]  }
 0x12e   :  { %707 = vmatprep.subr.bf16.mxu1 %v3237_v11  ;;  %3102 = vmatprep.subr.bf16.mxu0 %v3664_v0  ;;  %v100_v10 = vld [vmem:[#allocation2 + $0x30] sm:$0xff] }
 0x12f   :  { %v108_v11 = vld [vmem:[#allocation2 + $0x70] sm:$0xff] }
 0x131   :  { %708 = vmatpush1.bf16.msra.mxu1 %v3235_v12  ;;  %3103 = vmatpush3.bf16.msra.mxu0 %v3739_v3  ;;  %v3249_v3 = vld [vmem:[#allocation7 + $0x44] ss:$24 sps:$4 sm:$0xff]   ;;  %v134_v12 = vadd.f32 %v3746_v26, %v115_v8 }
 0x132   :  { %709 = vmatprep.subr.bf16.mxu1 %v3240_v13  ;;  %3104 = vmatprep.subr.bf16.mxu0 %v3664_v0 }
 0x135   :  { %710 = vmatpush1.bf16.msra.mxu1 %v3238_v1  ;;  %3105 = vmatpush3.bf16.msra.mxu0 %v3742_v7  ;;  %v3252_v7 = vld [vmem:[#allocation7 + $0x14] ss:$24 sps:$4 sm:$0xff]   ;;  %v116_v1 = vmax.f32 %v100_v10, 0.0  ;;  %v3321_v10 = vld [vmem:[#allocation7 + $0x1c4] ss:$24 sps:$4 sm:$0xff]  }
 0x136   :  { %711 = vmatprep.subr.bf16.mxu1 %v3243_v14  ;;  %3106 = vmatprep.subr.bf16.mxu0 %v3664_v0  ;;  %v124_v14 = vmax.f32 %v108_v11, 0.0  ;;  %v3863_v11 = vld [vmem:[#allocation5 + $0x10] sm:$0xff]  }
 0x139   :  { %712 = vmatpush1.bf16.msra.mxu1 %v3241_v15  ;;  %3107 = vmatpush3.bf16.msra.mxu0 %v3749_v30  ;;  %v788_v30 = vpack.c.b16 %v787_v58, %v787_v58  ;;  %v101_v15 = vld [vmem:[#allocation2 + $0x38] sm:$0xff] }
 0x13a   :  { %713 = vmatprep.subr.bf16.mxu1 %v3246_v2  ;;  %3108 = vmatprep.subr.bf16.mxu0 %v3664_v0  ;;  %v109_v2 = vld [vmem:[#allocation2 + $0x78] sm:$0xff] }
 0x13d   :  { %714 = vmatpush1.bf16.msra.mxu1 %v3244_v16  ;;  %3109 = vmatpush3.bf16.msra.mxu0 %v3757_v36  ;;  %v3253_v36 = vld [vmem:[#allocation7 + $0x2d0] ss:$24 sps:$4 sm:$0xff]   ;;  %v117_v16 = vmax.f32 %v101_v15, 0.0 }
 0x13e   :  { %715 = vmatprep.subr.bf16.mxu1 %v3249_v3  ;;  %3110 = vmatprep.subr.bf16.mxu0 %v3664_v0  ;;  %v125_v3 = vmax.f32 %v109_v2, 0.0  ;;  %v3867_v15 = vld [vmem:[#allocation5 + $0x8] sm:$0xff]  }
 0x13f   :  { %v3322_v2 = vld [vmem:[#allocation7 + $0x190] ss:$24 sps:$4 sm:$0xff]  }
 0x141   :  { %716 = vmatpush1.bf16.msra.mxu1 %v3247_v17  ;;  %3111 = vmatpush3.bf16.msra.mxu0 %v3769_v47  ;;  %v3261_v47 = vld [vmem:[#allocation7 + $0x2a4] ss:$24 sps:$4 sm:$0xff]   ;;  %v136_v17 = vadd.f32 %v134_v12, %v116_v1  ;;  %v3319_v12 = vld [vmem:[#allocation7 + $0x1c0] ss:$24 sps:$4 sm:$0xff]  }
 0x142   :  { %717 = vmatprep.subr.bf16.mxu1 %v3252_v7  ;;  %3112 = vmatprep.subr.bf16.mxu0 %v3664_v0 }
 0x145   :  { %718 = vmatpush1.bf16.msra.mxu1 %v3250_v18  ;;  %3113 = vmatpush3.bf16.msra.mxu0 %v3773_v54  ;;  %v3267_v54 = vld [vmem:[#allocation7 + $0x274] ss:$24 sps:$4 sm:$0xff]   ;;  %v3823_v18 = vadd.f32 %v136_v17, %v117_v16  ;;  %v3872_v17 = vld [vmem:[#allocation5] sm:$0xff]  }
 0x146   :  { %1120 = vmatprep.subr.bf16.mxu1 %v3255_v19  ;;  %1161 = vmatprep.subr.bf16.mxu0 %v3258_v21 }
 0x148   :  { %736 = vmatmul.mubr.bf16.vlgmr.msra.gmra.mxu1 %v332_v6  ;;  %3115 = vmatmul.mubr.bf16.vlgmr.msra.gmra.mxu0 %v788_v30  ;;  %v107_v6 = vld [vmem:[#allocation2 + $0x68] sm:$0xff] }
 0x149   :  { %1152 = vmatprep.mubr.bf16.mxu1 %v3666_v35  ;;  %1193 = vmatprep.mubr.bf16.mxu0 %v3666_v35  ;;  %v123_v9 = vmax.f32 %v107_v6, 0.0  ;;  %v3316_v6 = vld [vmem:[#allocation7 + $0x1f0] ss:$24 sps:$4 sm:$0xff]  }
 0x14a   :  { %1121 = vmatpush1.bf16.msra.mxu1 %v3253_v36  ;;  %1162 = vmatpush1.bf16.msra.mxu0 %v3256_v20  ;;  %v175_v36 = vsel %vm140_vm1, %v3823_v18, 0.0 }
 0x14b   :  { %1122 = vmatprep.subr.bf16.mxu1 %v3261_v47  ;;  %1163 = vmatprep.subr.bf16.mxu0 %v3264_v23  ;;  %v135_v13 = vadd.f32 %v3751_v31, %v123_v9  ;;  %v176_v20 = vrot.slane %v175_v36, 4 }
 0x14d   :  { %v137_v7 = vadd.f32 %v135_v13, %v124_v14  ;;  %v3324_v14 = vld [vmem:[#allocation7 + $0x194] ss:$24 sps:$4 sm:$0xff]  }
 0x14e   :  { %1123 = vmatpush1.bf16.msra.mxu1 %v3259_v22  ;;  %1164 = vmatpush1.bf16.msra.mxu0 %v3262_v24 }
 0x14f   :  { %1124 = vmatprep.subr.bf16.mxu1 %v3267_v54  ;;  %1165 = vmatprep.subr.bf16.mxu0 %v3270_v25  ;;  %v3825_v30 = vadd.f32 %v137_v7, %v125_v3  ;;  %v3325_v7 = vld [vmem:[#allocation7 + $0x450] ss:$24 sps:$4 sm:$0xff]  }
 0x151   :  { %v182_v26 = vsel %vm140_vm1, %v3825_v30, 0.0 }
 0x152   :  { %1125 = vmatpush1.bf16.msra.mxu1 %v3265_v27  ;;  %1166 = vmatpush1.bf16.msra.mxu0 %v3268_v28  ;;  %v183_v21 = vrot.slane %v182_v26, 4  ;;  %v3301_v27 = vld [vmem:[#allocation7 + $0x2e0] ss:$24 sps:$4 sm:$0xff]   ;;  %v177_v28 = vadd.f32 %v176_v20, %v175_v36  ;;  %v3327_v36 = vld [vmem:[#allocation7 + $0x454] ss:$24 sps:$4 sm:$0xff]  }
 0x153   :  { %1126 = vmatprep.subr.bf16.mxu1 %v3273_v29  ;;  %1167 = vmatprep.subr.bf16.mxu0 %v3276_v32  ;;  %v3333_v20 = vld [vmem:[#allocation7 + $0x424] ss:$24 sps:$4 sm:$0xff]  }
 0x154   :  { %v184_v29 = vadd.f32 %v183_v21, %v182_v26  ;;  %v3328_v26 = vld [vmem:[#allocation7 + $0x458] ss:$24 sps:$4 sm:$0xff]  }
 0x155   :  { %v3331_v21 = vld [vmem:[#allocation7 + $0x420] ss:$24 sps:$4 sm:$0xff]  }
 0x156   :  { %1127 = vmatpush1.bf16.msra.mxu1 %v3271_v33  ;;  %1168 = vmatpush1.bf16.msra.mxu0 %v3274_v38  ;;  %v3306_v33 = vld [vmem:[#allocation7 + $0x2b4] ss:$24 sps:$4 sm:$0xff]  }
 0x157   :  { %1128 = vmatprep.subr.bf16.mxu1 %v3279_v39  ;;  %1169 = vmatprep.subr.bf16.mxu0 %v3282_v40  ;;  %v3840_v40 = vld [vmem:[#allocation5 + $0x38] sm:$0xff]  }
 0x15a   :  { %1129 = vmatpush1.bf16.msra.mxu1 %v3277_v41  ;;  %1170 = vmatpush1.bf16.msra.mxu0 %v3280_v42  ;;  %v3304_v41 = vld [vmem:[#allocation7 + $0x2b0] ss:$24 sps:$4 sm:$0xff]   ;;  %v178_v42 = vrot.slane %v177_v28, 2 }
 0x15b   :  { %1130 = vmatprep.subr.bf16.mxu1 %v3285_v43  ;;  %1171 = vmatprep.subr.bf16.mxu0 %v3288_v44  ;;  %v185_v43 = vrot.slane %v184_v29, 2  ;;  %v3309_v44 = vld [vmem:[#allocation7 + $0x284] ss:$24 sps:$4 sm:$0xff]  }
 0x15e   :  { %1131 = vmatpush1.bf16.msra.mxu1 %v3283_v45  ;;  %1172 = vmatpush1.bf16.msra.mxu0 %v3286_v46  ;;  %v3847_v45 = vld [vmem:[#allocation5 + $0x30] sm:$0xff]   ;;  %v3307_v46 = vld [vmem:[#allocation7 + $0x280] ss:$24 sps:$4 sm:$0xff]  }
 0x15f   :  { %1132 = vmatprep.subr.bf16.mxu1 %v3291_v48  ;;  %1173 = vmatprep.subr.bf16.mxu0 %v3294_v49  ;;  %v179_v48 = vadd.f32 %v178_v42, %v177_v28  ;;  %v186_v49 = vadd.f32 %v185_v43, %v184_v29  ;;  %v3345_v28 = vld [vmem:[#allocation7 + $0x3c4] ss:$24 sps:$4 sm:$0xff]   ;;  %v3352_v42 = vld [vmem:[#allocation7 + $0x398] ss:$24 sps:$4 sm:$0xff]  }
 0x160   :  { %v3348_v29 = vld [vmem:[#allocation7 + $0x3cc] ss:$24 sps:$4 sm:$0xff]  }
 0x161   :  { %v3357_v43 = vld [vmem:[#allocation7 + $0x364] ss:$24 sps:$4 sm:$0xff]  }
 0x162   :  { %1133 = vmatpush1.bf16.msra.mxu1 %v3289_v50  ;;  %1174 = vmatpush1.bf16.msra.mxu0 %v3292_v51  ;;  %v3312_v50 = vld [vmem:[#allocation7 + $0x254] ss:$24 sps:$4 sm:$0xff]  }
 0x163   :  { %1134 = vmatprep.subr.bf16.mxu1 %v3297_v52  ;;  %1175 = vmatprep.subr.bf16.mxu0 %v3300_v53  ;;  %v3851_v51 = vld [vmem:[#allocation5 + $0x28] sm:$0xff]   ;;  %v180_v53 = vrot.slane %v179_v48, 1 }
 0x164   :  { %v3310_v52 = vld [vmem:[#allocation7 + $0x250] ss:$24 sps:$4 sm:$0xff]  }
 0x166   :  { %1135 = vmatpush1.bf16.msra.mxu1 %v3295_v55  ;;  %1176 = vmatpush1.bf16.msra.mxu0 %v3298_v56  ;;  %v187_v55 = vrot.slane %v186_v49, 1  ;;  %v3315_v56 = vld [vmem:[#allocation7 + $0x224] ss:$24 sps:$4 sm:$0xff]  }
 0x167   :  { %3118 = vmatprep.subr.bf16.mxu0 %v3664_v0  ;;  %1202 = vmatprep.subr.bf16.mxu1 %v3303_v34  ;;  %v3855_v34 = vld [vmem:[#allocation5 + $0x20] sm:$0xff]  }
 0x1e8   :  { %v3813_v57 = vpop.f32.mrf.mxu1  ;;  %v3815_v37 = vpop.f32.mrf.mxu0 }
 0x1ea   :  { %v3817_v58 = vpop.f32.mrf.mxu1  ;;  %v3819_v60 = vpop.f32.mrf.mxu0 }
 0x1ec   :  { %v659_v61 = vpop.f32.mrf.mxu1  ;;  %v700_v62 = vpop.f32.mrf.mxu0 }
 0x1ed   :  { %v3313_v61 = vld [vmem:[#allocation7 + $0x220] ss:$24 sps:$4 sm:$0xff]   ;;  %v181_v62 = vadd.f32 %v180_v53, %v179_v48 }
 0x1ee   :  { %v660_v63 = vpop.f32.mrf.mxu1  ;;  %v701_v4 = vpop.f32.mrf.mxu0  ;;  %v3358_v48 = vld [vmem:[#allocation7 + $0x368] ss:$24 sps:$4 sm:$0xff]   ;;  %v3364_v53 = vld [vmem:[#allocation7 + $0x338] ss:$24 sps:$4 sm:$0xff]  }
 0x1ef   :  { %v188_v63 = vadd.f32 %v187_v55, %v186_v49  ;;  %v3318_v4 = vld [vmem:[#allocation7 + $0x1f4] ss:$24 sps:$4 sm:$0xff]   ;;  %v1249_v8 = vpack.c.bf16 %v181_v62, %v181_v62  ;;  %v3369_v55 = vld [vmem:[#allocation7 + $0x304] ss:$24 sps:$4 sm:$0xff]   ;;  %v3370_v62 = vld [vmem:[#allocation7 + $0x308] ss:$24 sps:$4 sm:$0xff]  }
 0x1f0   :  { %v3363_v49 = vld [vmem:[#allocation7 + $0x334] ss:$24 sps:$4 sm:$0xff]  }
 0x1f1   :  { %v1250_v9 = vpack.c.bf16 %v188_v63, %v188_v63  ;;  %v1253_v13 = vunpack.c.l.b16 %v1249_v8  ;;  %v3375_v63 = vld [vmem:[#allocation7 + $0x464] ss:$24 sps:$4 sm:$0xff]  }
 0x1f3   :  { %v1254_v1 = vunpack.c.l.b16 %v1250_v9 }
 0x1f5   :  { %v1255_v16 = vsel %vm239_vm2, %v1254_v1, %v1253_v13 }
 0x1f6   :  { %v1256_v3 = vpack.c.b16 %v1255_v16, %v1255_v16 }
 0x208   :  { %v3831_v19 = vpop.f32.mrf.mxu1  ;;  %v824_v31 = vpop.f32.mrf.mxu0 }
 0x209   :  { %v825_v47 = vadd.f32 %v3789_v59, %v824_v31  ;;  %v3330_v31 = vld [vmem:[#allocation7 + $0x45c] ss:$24 sps:$4 sm:$0xff]  }
 0x20a   :  { %v3834_v22 = vpop.f32.mrf.mxu1  ;;  %v3116_v23 = vpop.f32.mrf.mxu0 }
 0x20b   :  { %v830_v24 = vmax.f32 %v825_v47, 0.0  ;;  %v3336_v47 = vld [vmem:[#allocation7 + $0x42c] ss:$24 sps:$4 sm:$0xff]   ;;  %v3334_v23 = vld [vmem:[#allocation7 + $0x428] ss:$24 sps:$4 sm:$0xff]  }
 0x20c   :  { %v741_v54 = vpop.f32.mrf.mxu1  ;;  %v827_v25 = vpop.f32.mrf.mxu0 }
 0x20d   :  { %v3836_v32 = vpack.c.bf16 %v830_v24, %v830_v24  ;;  %v3339_v24 = vld [vmem:[#allocation7 + $0x3f4] ss:$24 sps:$4 sm:$0xff]   ;;  %v3337_v25 = vld [vmem:[#allocation7 + $0x3f0] ss:$24 sps:$4 sm:$0xff]  }
 0x20e   :  { %v742_v38 = vpop.f32.mrf.mxu1  ;;  %v3117_v39 = vpop.f32.mrf.mxu0  ;;  %v3342_v54 = vld [vmem:[#allocation7 + $0x3fc] ss:$24 sps:$4 sm:$0xff]  }
 0x20f   :  { %1153 = vmatmul.mubr.bf16.vlgmr.msra.gmra.mxu1 %v3836_v32  ;;  %1194 = vmatmul.mubr.bf16.vlgmr.msra.gmra.mxu0 %v3836_v32  ;;  %v3351_v38 = vld [vmem:[#allocation7 + $0x394] ss:$24 sps:$4 sm:$0xff]  }
 0x210   :  { %1203 = vmatpush1.bf16.msra.mxu1 %v3301_v27  ;;  %3119 = vmatpush3.bf16.msra.mxu0 %v3840_v40  ;;  %v3340_v27 = vld [vmem:[#allocation7 + $0x3f8] ss:$24 sps:$4 sm:$0xff]   ;;  %v3354_v39 = vld [vmem:[#allocation7 + $0x39c] ss:$24 sps:$4 sm:$0xff]  }
 0x211   :  { %1204 = vmatprep.subr.bf16.mxu1 %v3306_v33  ;;  %3120 = vmatprep.subr.bf16.mxu0 %v3664_v0  ;;  %v3346_v33 = vld [vmem:[#allocation7 + $0x3c8] ss:$24 sps:$4 sm:$0xff]  }
 0x212   :  { %1234 = vmatprep.mubr.bf16.mxu1 %v3666_v35  ;;  %3134 = vmatprep.mubr.msk.bf16.mxu0 %vm3665_vm0, %v3664_v0 }
 0x214   :  { %1205 = vmatpush1.bf16.msra.mxu1 %v3304_v41  ;;  %3121 = vmatpush3.bf16.msra.mxu0 %v3847_v45  ;;  %v3349_v41 = vld [vmem:[#allocation7 + $0x390] ss:$24 sps:$4 sm:$0xff]  }
 0x215   :  { %1206 = vmatprep.subr.bf16.mxu1 %v3309_v44  ;;  %3122 = vmatprep.subr.bf16.mxu0 %v3664_v0  ;;  %v3360_v44 = vld [vmem:[#allocation7 + $0x36c] ss:$24 sps:$4 sm:$0xff]  }
 0x218   :  { %1207 = vmatpush1.bf16.msra.mxu1 %v3307_v46  ;;  %3123 = vmatpush3.bf16.msra.mxu0 %v3851_v51  ;;  %v3355_v46 = vld [vmem:[#allocation7 + $0x360] ss:$24 sps:$4 sm:$0xff]  }
 0x219   :  { %1208 = vmatprep.subr.bf16.mxu1 %v3312_v50  ;;  %3124 = vmatprep.subr.bf16.mxu0 %v3664_v0  ;;  %v3366_v50 = vld [vmem:[#allocation7 + $0x33c] ss:$24 sps:$4 sm:$0xff]  }
 0x21c   :  { %1209 = vmatpush1.bf16.msra.mxu1 %v3310_v52  ;;  %3125 = vmatpush3.bf16.msra.mxu0 %v3855_v34  ;;  %v3361_v52 = vld [vmem:[#allocation7 + $0x330] ss:$24 sps:$4 sm:$0xff]  }
 0x21d   :  { %1210 = vmatprep.subr.bf16.mxu1 %v3315_v56  ;;  %3126 = vmatprep.subr.bf16.mxu0 %v3664_v0  ;;  %v3372_v56 = vld [vmem:[#allocation7 + $0x30c] ss:$24 sps:$4 sm:$0xff]  }
 0x220   :  { %1211 = vmatpush1.bf16.msra.mxu1 %v3313_v61  ;;  %3127 = vmatpush3.bf16.msra.mxu0 %v3859_v5  ;;  %v3367_v61 = vld [vmem:[#allocation7 + $0x300] ss:$24 sps:$4 sm:$0xff]  }
 0x221   :  { %1212 = vmatprep.subr.bf16.mxu1 %v3318_v4  ;;  %3128 = vmatprep.subr.bf16.mxu0 %v3664_v0  ;;  %v745_v4 = vlaneseq }
 0x224   :  { %1213 = vmatpush1.bf16.msra.mxu1 %v3316_v6  ;;  %3129 = vmatpush3.bf16.msra.mxu0 %v3863_v11  ;;  %v746_v6 = vshrl.u32 %v745_v4, 7 }
 0x225   :  { %1214 = vmatprep.subr.bf16.mxu1 %v3321_v10  ;;  %3130 = vmatprep.subr.bf16.mxu0 %v3664_v0  ;;  %v209_v10 = vld [vmem:[#allocation8] sm:$0x3f] }
 0x226   :  { %v747_v8 = vsub.s32 0, %v746_v6  ;;  %v755_v9 = vsub.s32 2, %v746_v6  ;;  %v759_v13 = vsub.s32 3, %v746_v6 }
 0x228   :  { %1215 = vmatpush1.bf16.msra.mxu1 %v3319_v12  ;;  %3131 = vmatpush3.bf16.msra.mxu0 %v3867_v15  ;;  %v751_v12 = vsub.s32 1, %v746_v6  ;;  %v748_v1 = vrot.slane %v209_v10, %v747_v8  ;;  %v760_v16 = vrot.slane %v209_v10, %v759_v13  ;;  %v3381_v13 = vld [vmem:[#allocation7 + $0x404] ss:$24 sps:$4 sm:$0xff]  }
 0x229   :  { %1216 = vmatprep.subr.bf16.mxu1 %v3324_v14  ;;  %3132 = vmatprep.subr.bf16.mxu0 %v3664_v0  ;;  %v756_v14 = vrot.slane %v209_v10, %v755_v9 }
 0x22c   :  { %1217 = vmatpush1.bf16.msra.mxu1 %v3322_v2  ;;  %3133 = vmatpush3.bf16.msra.mxu0 %v3872_v17  ;;  %v752_v2 = vrot.slane %v209_v10, %v751_v12 }
 0x22d   :  { %1588 = vmatprep.subr.bf16.mxu1 %v3327_v36  ;;  %1629 = vmatprep.subr.bf16.mxu0 %v3330_v31 }
 0x22e   :  { %v776_v31 = vadd.f32 %v752_v2, %v3817_v58  ;;  %v191_v58 = vrot.slane %v3823_v18, 3 }
 0x22f   :  { %1235 = vmatmul.mubr.bf16.vlgmr.msra.gmra.mxu1 %v3836_v32  ;;  %3135 = vmatmul.mubr.bf16.vlgmr.msra.gmra.mxu0 %v1256_v3  ;;  %v3343_v32 = vld [vmem:[#allocation7 + $0x3c0] ss:$24 sps:$4 sm:$0xff]   ;;  %v775_v3 = vadd.f32 %v748_v1, %v3813_v57 }
 0x230   :  { %1620 = vmatprep.mubr.bf16.mxu1 %v3666_v35  ;;  %1661 = vmatprep.mubr.bf16.mxu0 %v3666_v35  ;;  %v3379_v1 = vld [vmem:[#allocation7 + $0x400] ss:$24 sps:$4 sm:$0xff]  }
 0x231   :  { %1589 = vmatpush1.bf16.msra.mxu1 %v3325_v7  ;;  %1630 = vmatpush1.bf16.msra.mxu0 %v3328_v26  ;;  %v777_v7 = vadd.f32 %v756_v14, %v3815_v37 }
 0x232   :  { %1590 = vmatprep.subr.bf16.mxu1 %v3333_v20  ;;  %1631 = vmatprep.subr.bf16.mxu0 %v3336_v47  ;;  %v778_v20 = vadd.f32 %v760_v16, %v3819_v60  ;;  %v192_v60 = vrot.slane %v3825_v30, 3  ;;  %v3382_v16 = vld [vmem:[#allocation7 + $0x3d0] ss:$24 sps:$4 sm:$0xff]  }
 0x235   :  { %1591 = vmatpush1.bf16.msra.mxu1 %v3331_v21  ;;  %1632 = vmatpush1.bf16.msra.mxu0 %v3334_v23 }
 0x236   :  { %1592 = vmatprep.subr.bf16.mxu1 %v3339_v24  ;;  %1633 = vmatprep.subr.bf16.mxu0 %v3342_v54 }
 0x239   :  { %1593 = vmatpush1.bf16.msra.mxu1 %v3337_v25  ;;  %1634 = vmatpush1.bf16.msra.mxu0 %v3340_v27 }
 0x23a   :  { %1594 = vmatprep.subr.bf16.mxu1 %v3345_v28  ;;  %1635 = vmatprep.subr.bf16.mxu0 %v3348_v29  ;;  %v763_v29 = vsub.s32 4, %v746_v6 }
 0x23d   :  { %1595 = vmatpush1.bf16.msra.mxu1 %v3343_v32  ;;  %1636 = vmatpush1.bf16.msra.mxu0 %v3346_v33  ;;  %v767_v32 = vsub.s32 5, %v746_v6  ;;  %v764_v33 = vrot.slane %v209_v10, %v763_v29  ;;  %v3378_v6 = vld [vmem:[#allocation7 + $0x434] ss:$24 sps:$4 sm:$0xff]  }
 0x23e   :  { %1596 = vmatprep.subr.bf16.mxu1 %v3351_v38  ;;  %1637 = vmatprep.subr.bf16.mxu0 %v3354_v39  ;;  %v195_v39 = vsel %vm140_vm1, %v191_v58, 0.0  ;;  %v3399_v58 = vld [vmem:[#allocation7 + $0x5d4] ss:$24 sps:$4 sm:$0xff]  }
 0x23f   :  { %v768_v38 = vrot.slane %v209_v10, %v767_v32 }
 0x241   :  { %1597 = vmatpush1.bf16.msra.mxu1 %v3349_v41  ;;  %1638 = vmatpush1.bf16.msra.mxu0 %v3352_v42  ;;  %v202_v41 = vsel %vm140_vm1, %v192_v60, 0.0  ;;  %v779_v42 = vadd.f32 %v764_v33, %v3831_v19  ;;  %v3400_v60 = vld [vmem:[#allocation7 + $0x5d8] ss:$24 sps:$4 sm:$0xff]   ;;  %v3405_v33 = vld [vmem:[#allocation7 + $0x5a4] ss:$24 sps:$4 sm:$0xff]  }
 0x242   :  { %1598 = vmatprep.subr.bf16.mxu1 %v3357_v43  ;;  %1639 = vmatprep.subr.bf16.mxu0 %v3360_v44 }
 0x245   :  { %1599 = vmatpush1.bf16.msra.mxu1 %v3355_v46  ;;  %1640 = vmatpush1.bf16.msra.mxu0 %v3358_v48  ;;  %v196_v46 = vrot.slane %v195_v39, 4  ;;  %v203_v48 = vrot.slane %v202_v41, 4 }
 0x246   :  { %1600 = vmatprep.subr.bf16.mxu1 %v3363_v49  ;;  %1641 = vmatprep.subr.bf16.mxu0 %v3366_v50  ;;  %v780_v49 = vadd.f32 %v768_v38, %v3834_v22  ;;  %v3376_v22 = vld [vmem:[#allocation7 + $0x430] ss:$24 sps:$4 sm:$0xff]   ;;  %v3408_v38 = vld [vmem:[#allocation7 + $0x5ac] ss:$24 sps:$4 sm:$0xff]  }
 0x247   :  { %v204_v19 = vadd.f32 %v203_v48, %v202_v41  ;;  %v3414_v41 = vld [vmem:[#allocation7 + $0x57c] ss:$24 sps:$4 sm:$0xff]   ;;  %v3415_v48 = vld [vmem:[#allocation7 + $0x540] ss:$24 sps:$4 sm:$0xff]  }
 0x249   :  { %1601 = vmatpush1.bf16.msra.mxu1 %v3361_v52  ;;  %1642 = vmatpush1.bf16.msra.mxu0 %v3364_v53  ;;  %v205_v12 = vrot.slane %v204_v19, 2 }
 0x24a   :  { %1602 = vmatprep.subr.bf16.mxu1 %v3369_v55  ;;  %1643 = vmatprep.subr.bf16.mxu0 %v3372_v56 }
 0x24b   :  { %v206_v2 = vadd.f32 %v205_v12, %v204_v19  ;;  %v3435_v19 = vld [vmem:[#allocation7 + $0x4b4] ss:$24 sps:$4 sm:$0xff]   ;;  %v3442_v12 = vld [vmem:[#allocation7 + $0x488] ss:$24 sps:$4 sm:$0xff]  }
 0x24d   :  { %1603 = vmatpush1.bf16.msra.mxu1 %v3367_v61  ;;  %1644 = vmatpush1.bf16.msra.mxu0 %v3370_v62  ;;  %v3373_v62 = vld [vmem:[#allocation7 + $0x460] ss:$24 sps:$4 sm:$0xff]  }
 0x24e   :  { %3138 = vmatprep.subr.bf16.mxu0 %v3664_v0  ;;  %1670 = vmatprep.subr.bf16.mxu1 %v3375_v63  ;;  %v197_v63 = vadd.f32 %v196_v46, %v195_v39  ;;  %v3411_v39 = vld [vmem:[#allocation7 + $0x574] ss:$24 sps:$4 sm:$0xff]  }
 0x24f   :  { %v3420_v46 = vld [vmem:[#allocation7 + $0x54c] ss:$24 sps:$4 sm:$0xff]  }
 0x250   :  { %v198_v10 = vrot.slane %v197_v63, 2 }
 0x252   :  { %v199_v14 = vadd.f32 %v198_v10, %v197_v63  ;;  %v3430_v63 = vld [vmem:[#allocation7 + $0x4e8] ss:$24 sps:$4 sm:$0xff]   ;;  %v3444_v10 = vld [vmem:[#allocation7 + $0x48c] ss:$24 sps:$4 sm:$0xff]  }
 0x2cf   :  { %v1154_v36 = vpop.f32.mrf.mxu1  ;;  %v1195_v26 = vpop.f32.mrf.mxu0 }
 0x2d0   :  { %v3883_v21 = vadd.f32 %v1154_v36, %v775_v3  ;;  %v3885_v47 = vadd.f32 %v1195_v26, %v777_v7  ;;  %v200_v3 = vrot.slane %v199_v14, 1  ;;  %v207_v7 = vrot.slane %v206_v2, 1  ;;  %v3387_v36 = vld [vmem:[#allocation7 + $0x3a4] ss:$24 sps:$4 sm:$0xff]  }
 0x2d1   :  { %v1156_v23 = vpop.f32.mrf.mxu1  ;;  %v1197_v24 = vpop.f32.mrf.mxu0 }
 0x2d2   :  { %v3887_v54 = vadd.f32 %v1156_v23, %v776_v31  ;;  %v3889_v25 = vadd.f32 %v1197_v24, %v778_v20  ;;  %v201_v26 = vadd.f32 %v200_v3, %v199_v14  ;;  %v208_v31 = vadd.f32 %v207_v7, %v206_v2  ;;  %v3390_v20 = vld [vmem:[#allocation7 + $0x374] ss:$24 sps:$4 sm:$0xff]  }
 0x2d3   :  { %v1158_v27 = vpop.f32.mrf.mxu1  ;;  %v1199_v57 = vpop.f32.mrf.mxu0 }
 0x2d4   :  { %v1717_v23 = vpack.c.bf16 %v201_v26, %v201_v26  ;;  %v1718_v24 = vpack.c.bf16 %v208_v31, %v208_v31  ;;  %v3393_v27 = vld [vmem:[#allocation7 + $0x344] ss:$24 sps:$4 sm:$0xff]  }
 0x2d5   :  { %v1159_v28 = vpop.f32.mrf.mxu1  ;;  %v1200_v37 = vpop.f32.mrf.mxu0 }
 0x2d6   :  { %v1721_v57 = vunpack.c.l.b16 %v1717_v23  ;;  %v1722_v28 = vunpack.c.l.b16 %v1718_v24  ;;  %v3396_v37 = vld [vmem:[#allocation7 + $0x314] ss:$24 sps:$4 sm:$0xff]  }
 0x2d8   :  { %v1723_v29 = vsel %vm239_vm2, %v1722_v28, %v1721_v57 }
 0x2d9   :  { %v1724_v32 = vpack.c.b16 %v1723_v29, %v1723_v29  ;;  %v3450_v29 = vld [vmem:[#allocation7 + $0x5b4] ss:$24 sps:$4 sm:$0xff]  }
 0x2ef   :  { %v1236_v43 = vpop.f32.mrf.mxu1  ;;  %v1292_v44 = vpop.f32.mrf.mxu0 }
 0x2f0   :  { %v3897_v50 = vadd.f32 %v1236_v43, %v779_v42  ;;  %v1293_v18 = vadd.f32 %v3789_v59, %v1292_v44  ;;  %v3409_v42 = vld [vmem:[#allocation7 + $0x570] ss:$24 sps:$4 sm:$0xff]   ;;  %v3417_v44 = vld [vmem:[#allocation7 + $0x544] ss:$24 sps:$4 sm:$0xff]  }
 0x2f1   :  { %v1238_v52 = vpop.f32.mrf.mxu1  ;;  %v3136_v30 = vpop.f32.mrf.mxu0  ;;  %v3412_v43 = vld [vmem:[#allocation7 + $0x578] ss:$24 sps:$4 sm:$0xff]  }
 0x2f2   :  { %v1298_v53 = vmax.f32 %v1293_v18, 0.0  ;;  %v3900_v55 = vadd.f32 %v1238_v52, %v780_v49  ;;  %v3418_v49 = vld [vmem:[#allocation7 + $0x548] ss:$24 sps:$4 sm:$0xff]   ;;  %v3423_v18 = vld [vmem:[#allocation7 + $0x514] ss:$24 sps:$4 sm:$0xff]  }
 0x2f3   :  { %v1240_v56 = vpop.f32.mrf.mxu1  ;;  %v1295_v61 = vpop.f32.mrf.mxu0  ;;  %v3426_v52 = vld [vmem:[#allocation7 + $0x51c] ss:$24 sps:$4 sm:$0xff]   ;;  %v3421_v30 = vld [vmem:[#allocation7 + $0x510] ss:$24 sps:$4 sm:$0xff]  }
 0x2f4   :  { %v3902_v4 = vpack.c.bf16 %v1298_v53, %v1298_v53  ;;  %v3424_v53 = vld [vmem:[#allocation7 + $0x518] ss:$24 sps:$4 sm:$0xff]   ;;  %v3429_v56 = vld [vmem:[#allocation7 + $0x4e4] ss:$24 sps:$4 sm:$0xff]  }
 0x2f5   :  { %v1241_v8 = vpop.f32.mrf.mxu1  ;;  %v3137_v9 = vpop.f32.mrf.mxu0  ;;  %v3432_v61 = vld [vmem:[#allocation7 + $0x4ec] ss:$24 sps:$4 sm:$0xff]  }
 0x2f6   :  { %1621 = vmatmul.mubr.bf16.vlgmr.msra.gmra.mxu1 %v3902_v4  ;;  %1662 = vmatmul.mubr.bf16.vlgmr.msra.gmra.mxu0 %v3902_v4  ;;  %v3436_v8 = vld [vmem:[#allocation7 + $0x4b8] ss:$24 sps:$4 sm:$0xff]   ;;  %v3441_v9 = vld [vmem:[#allocation7 + $0x484] ss:$24 sps:$4 sm:$0xff]  }
 0x2f7   :  { %1671 = vmatpush1.bf16.msra.mxu1 %v3373_v62  ;;  %3139 = vmatpush3.bf16.msra.mxu0 %v3840_v40  ;;  %v3384_v40 = vld [vmem:[#allocation7 + $0x3d4] ss:$24 sps:$4 sm:$0xff]   ;;  %v3427_v62 = vld [vmem:[#allocation7 + $0x4e0] ss:$24 sps:$4 sm:$0xff]  }
 0x2f8   :  { %1672 = vmatprep.subr.bf16.mxu1 %v3378_v6  ;;  %3140 = vmatprep.subr.bf16.mxu0 %v3664_v0  ;;  %v3433_v6 = vld [vmem:[#allocation7 + $0x4b0] ss:$24 sps:$4 sm:$0xff]  }
 0x2f9   :  { %1702 = vmatprep.mubr.bf16.mxu1 %v3666_v35  ;;  %3154 = vmatprep.mubr.msk.bf16.mxu0 %vm3665_vm0, %v3664_v0 }
 0x2fb   :  { %1673 = vmatpush1.bf16.msra.mxu1 %v3376_v22  ;;  %3141 = vmatpush3.bf16.msra.mxu0 %v3847_v45  ;;  %v3385_v45 = vld [vmem:[#allocation7 + $0x3a0] ss:$24 sps:$4 sm:$0xff]  }
 0x2fc   :  { %1674 = vmatprep.subr.bf16.mxu1 %v3381_v13  ;;  %3142 = vmatprep.subr.bf16.mxu0 %v3664_v0  ;;  %v3439_v22 = vld [vmem:[#allocation7 + $0x480] ss:$24 sps:$4 sm:$0xff]   ;;  %v3447_v13 = vld [vmem:[#allocation7 + $0x5e4] ss:$24 sps:$4 sm:$0xff]  }
 0x2ff   :  { %1675 = vmatpush1.bf16.msra.mxu1 %v3379_v1  ;;  %3143 = vmatpush3.bf16.msra.mxu0 %v3851_v51  ;;  %v3388_v51 = vld [vmem:[#allocation7 + $0x370] ss:$24 sps:$4 sm:$0xff]   ;;  %v3469_v1 = vld [vmem:[#allocation10 + $0x78] sm:$0xff]  }
 0x300   :  { %1676 = vmatprep.subr.bf16.mxu1 %v3384_v40  ;;  %3144 = vmatprep.subr.bf16.mxu0 %v3664_v0 }
 0x303   :  { %1677 = vmatpush1.bf16.msra.mxu1 %v3382_v16  ;;  %3145 = vmatpush3.bf16.msra.mxu0 %v3855_v34  ;;  %v3391_v34 = vld [vmem:[#allocation7 + $0x340] ss:$24 sps:$4 sm:$0xff]  }
 0x304   :  { %1678 = vmatprep.subr.bf16.mxu1 %v3387_v36  ;;  %3146 = vmatprep.subr.bf16.mxu0 %v3664_v0 }
 0x307   :  { %1679 = vmatpush1.bf16.msra.mxu1 %v3385_v45  ;;  %3147 = vmatpush3.bf16.msra.mxu0 %v3859_v5  ;;  %v3394_v5 = vld [vmem:[#allocation7 + $0x310] ss:$24 sps:$4 sm:$0xff]  }
 0x308   :  { %1680 = vmatprep.subr.bf16.mxu1 %v3390_v20  ;;  %3148 = vmatprep.subr.bf16.mxu0 %v3664_v0 }
 0x30b   :  { %1681 = vmatpush1.bf16.msra.mxu1 %v3388_v51  ;;  %3149 = vmatpush3.bf16.msra.mxu0 %v3863_v11  ;;  %v3397_v11 = vld [vmem:[#allocation7 + $0x5d0] ss:$24 sps:$4 sm:$0xff]  }
 0x30c   :  { %1682 = vmatprep.subr.bf16.mxu1 %v3393_v27  ;;  %3150 = vmatprep.subr.bf16.mxu0 %v3664_v0 }
 0x30f   :  { %1683 = vmatpush1.bf16.msra.mxu1 %v3391_v34  ;;  %3151 = vmatpush3.bf16.msra.mxu0 %v3867_v15  ;;  %v3402_v15 = vld [vmem:[#allocation7 + $0x5dc] ss:$24 sps:$4 sm:$0xff]  }
 0x310   :  { %1684 = vmatprep.subr.bf16.mxu1 %v3396_v37  ;;  %3152 = vmatprep.subr.bf16.mxu0 %v3664_v0  ;;  %v3403_v0 = vld [vmem:[#allocation7 + $0x5a0] ss:$24 sps:$4 sm:$0xff]  }
 0x311   :  { %v3445_v37 = vld [vmem:[#allocation7 + $0x5e0] ss:$24 sps:$4 sm:$0xff]  }
 0x313   :  { %1685 = vmatpush1.bf16.msra.mxu1 %v3394_v5  ;;  %3153 = vmatpush3.bf16.msra.mxu0 %v3872_v17  ;;  %v3406_v17 = vld [vmem:[#allocation7 + $0x5a8] ss:$24 sps:$4 sm:$0xff]  }
 0x314   :  { %2056 = vmatprep.subr.bf16.mxu1 %v3399_v58  ;;  %2097 = vmatprep.subr.bf16.mxu0 %v3402_v15  ;;  %v3473_v15 = vld [vmem:[#allocation10 + $0x70] sm:$0xff]  }
 0x316   :  { %1703 = vmatmul.mubr.bf16.vlgmr.msra.gmra.mxu1 %v3902_v4  ;;  %3155 = vmatmul.mubr.bf16.vlgmr.msra.gmra.mxu0 %v1724_v32  ;;  %v3438_v4 = vld [vmem:[#allocation7 + $0x4bc] ss:$24 sps:$4 sm:$0xff]  }
 0x317   :  { %2088 = vmatprep.mubr.bf16.mxu1 %v3666_v35  ;;  %2129 = vmatprep.mubr.bf16.mxu0 %v3666_v35  ;;  %v3470_v32 = vld [vmem:[#allocation10 + $0x38] sm:$0xff]  }
 0x318   :  { %2057 = vmatpush1.bf16.msra.mxu1 %v3397_v11  ;;  %2098 = vmatpush1.bf16.msra.mxu0 %v3400_v60  ;;  %v3477_v60 = vld [vmem:[#allocation10 + $0x68] sm:$0xff]  }
 0x319   :  { %2058 = vmatprep.subr.bf16.mxu1 %v3405_v33  ;;  %2099 = vmatprep.subr.bf16.mxu0 %v3408_v38  ;;  %v3451_v33 = vld [vmem:[#allocation7 + $0x580] ss:$24 sps:$4 sm:$0xff]   ;;  %v3478_v38 = vld [vmem:[#allocation10 + $0x28] sm:$0xff]  }
 0x31c   :  { %2059 = vmatpush1.bf16.msra.mxu1 %v3403_v0  ;;  %2100 = vmatpush1.bf16.msra.mxu0 %v3406_v17  ;;  %v3456_v0 = vld [vmem:[#allocation7 + $0x554] ss:$24 sps:$4 sm:$0xff]  }
 0x31d   :  { %2060 = vmatprep.subr.bf16.mxu1 %v3411_v39  ;;  %2101 = vmatprep.subr.bf16.mxu0 %v3414_v41  ;;  %v3481_v17 = vld [vmem:[#allocation10 + $0x60] sm:$0xff]  }
 0x31e   :  { %v3454_v39 = vld [vmem:[#allocation7 + $0x550] ss:$24 sps:$4 sm:$0xff]   ;;  %v3459_v41 = vld [vmem:[#allocation7 + $0x524] ss:$24 sps:$4 sm:$0xff]  }
 0x320   :  { %2061 = vmatpush1.bf16.msra.mxu1 %v3409_v42  ;;  %2102 = vmatpush1.bf16.msra.mxu0 %v3412_v43  ;;  %v3485_v42 = vld [vmem:[#allocation10 + $0x58] sm:$0xff]  }
 0x321   :  { %2062 = vmatprep.subr.bf16.mxu1 %v3417_v44  ;;  %2103 = vmatprep.subr.bf16.mxu0 %v3420_v46  ;;  %v3457_v43 = vld [vmem:[#allocation7 + $0x520] ss:$24 sps:$4 sm:$0xff]   ;;  %v3462_v44 = vld [vmem:[#allocation7 + $0x4f4] ss:$24 sps:$4 sm:$0xff]  }
 0x322   :  { %v3486_v46 = vld [vmem:[#allocation10 + $0x18] sm:$0xff]  }
 0x324   :  { %2063 = vmatpush1.bf16.msra.mxu1 %v3415_v48  ;;  %2104 = vmatpush1.bf16.msra.mxu0 %v3418_v49  ;;  %v3489_v48 = vld [vmem:[#allocation10 + $0x50] sm:$0xff]   ;;  %v3460_v49 = vld [vmem:[#allocation7 + $0x4f0] ss:$24 sps:$4 sm:$0xff]  }
 0x325   :  { %2064 = vmatprep.subr.bf16.mxu1 %v3423_v18  ;;  %2105 = vmatprep.subr.bf16.mxu0 %v3426_v52  ;;  %v3465_v18 = vld [vmem:[#allocation7 + $0x4c4] ss:$24 sps:$4 sm:$0xff]  }
 0x326   :  { %v3490_v52 = vld [vmem:[#allocation10 + $0x10] sm:$0xff]  }
 0x328   :  { %2065 = vmatpush1.bf16.msra.mxu1 %v3421_v30  ;;  %2106 = vmatpush1.bf16.msra.mxu0 %v3424_v53  ;;  %v3463_v30 = vld [vmem:[#allocation7 + $0x4c0] ss:$24 sps:$4 sm:$0xff]   ;;  %v3468_v53 = vld [vmem:[#allocation7 + $0x494] ss:$24 sps:$4 sm:$0xff]  }
 0x329   :  { %2066 = vmatprep.subr.bf16.mxu1 %v3429_v56  ;;  %2107 = vmatprep.subr.bf16.mxu0 %v3432_v61  ;;  %v3466_v56 = vld [vmem:[#allocation7 + $0x490] ss:$24 sps:$4 sm:$0xff]   ;;  %v3471_v61 = vld [vmem:[#allocation10 + $0xf8] sm:$0xff]  }
 0x32c   :  { %2067 = vmatpush1.bf16.msra.mxu1 %v3427_v62  ;;  %2108 = vmatpush1.bf16.msra.mxu0 %v3430_v63  ;;  %v3472_v62 = vld [vmem:[#allocation10 + $0xb8] sm:$0xff]   ;;  %v3475_v63 = vld [vmem:[#allocation10 + $0xf0] sm:$0xff]  }
 0x32d   :  { %2068 = vmatprep.subr.bf16.mxu1 %v3435_v19  ;;  %2109 = vmatprep.subr.bf16.mxu0 %v3438_v4  ;;  %v3476_v19 = vld [vmem:[#allocation10 + $0xb0] sm:$0xff]   ;;  %v3479_v4 = vld [vmem:[#allocation10 + $0xe8] sm:$0xff]  }
 0x330   :  { %2069 = vmatpush1.bf16.msra.mxu1 %v3433_v6  ;;  %2110 = vmatpush1.bf16.msra.mxu0 %v3436_v8  ;;  %v3480_v6 = vld [vmem:[#allocation10 + $0xa8] sm:$0xff]   ;;  %v3483_v8 = vld [vmem:[#allocation10 + $0xe0] sm:$0xff]  }
 0x331   :  { %2070 = vmatprep.subr.bf16.mxu1 %v3441_v9  ;;  %2111 = vmatprep.subr.bf16.mxu0 %v3444_v10  ;;  %v3484_v9 = vld [vmem:[#allocation10 + $0xa0] sm:$0xff]   ;;  %v3488_v10 = vld [vmem:[#allocation10 + $0x98] sm:$0xff]  }
 0x334   :  { %2071 = vmatpush1.bf16.msra.mxu1 %v3439_v22  ;;  %2112 = vmatpush1.bf16.msra.mxu0 %v3442_v12  ;;  %v3487_v22 = vld [vmem:[#allocation10 + $0xd8] sm:$0xff]   ;;  %v3491_v12 = vld [vmem:[#allocation10 + $0xd0] sm:$0xff]  }
 0x335   :  { %2138 = vmatprep.subr.bf16.mxu1 %v3447_v13  ;;  %3012 = vmatprep.subr.bf16.mxu0 %v3469_v1  ;;  %v3492_v13 = vld [vmem:[#allocation10 + $0x90] sm:$0xff]   ;;  %v3493_v1 = vld [vmem:[#allocation10 + $0x48] sm:$0xff]  }
 0x3b6   :  { %v1622_v14 = vpop.f32.mrf.mxu1  ;;  %v1663_v2 = vpop.f32.mrf.mxu0 }
 0x3b7   :  { %v3929_v40 = vadd.f32 %v1622_v14, %v3883_v21  ;;  %v3932_v16 = vadd.f32 %v1663_v2, %v3885_v47  ;;  %v3494_v14 = vld [vmem:[#allocation10 + $0x8] sm:$0xff]  }
 0x3b8   :  { %v1624_v3 = vpop.f32.mrf.mxu1  ;;  %v1665_v7 = vpop.f32.mrf.mxu0  ;;  %v3495_v2 = vld [vmem:[#allocation10 + $0xc8] sm:$0xff]  }
 0x3b9   :  { %v3935_v36 = vadd.f32 %v1624_v3, %v3887_v54  ;;  %v3938_v45 = vadd.f32 %v1665_v7, %v3889_v25  ;;  %v3496_v3 = vld [vmem:[#allocation10 + $0x88] sm:$0xff]   ;;  %v3497_v7 = vld [vmem:[#allocation10 + $0x40] sm:$0xff]  }
 0x3ba   :  { %v1626_v26 = vpop.f32.mrf.mxu1  ;;  %v1667_v31 = vpop.f32.mrf.mxu0 }
 0x3bb   :  { %v3498_v26 = vld [vmem:[#allocation10] sm:$0xff]  }
 0x3bc   :  { %v1627_v20 = vpop.f32.mrf.mxu1  ;;  %v1668_v51 = vpop.f32.mrf.mxu0  ;;  %v3499_v31 = vld [vmem:[#allocation10 + $0xc0] sm:$0xff]  }
 0x3bd   :  { %v3500_v20 = vld [vmem:[#allocation10 + $0x80] sm:$0xff]   ;;  %v3501_v51 = vld [vmem:[#allocation10 + $0x178] sm:$0xff]  }
 0x3d6   :  { %v1704_v23 = vpop.f32.mrf.mxu1  ;;  %v1760_v24 = vpop.f32.mrf.mxu0 }
 0x3d7   :  { %v3941_v21 = vadd.f32 %v1704_v23, %v3897_v50  ;;  %v1761_v47 = vadd.f32 %v3789_v59, %v1760_v24  ;;  %v3448_v50 = vld [vmem:[#allocation7 + $0x5b0] ss:$24 sps:$4 sm:$0xff]   ;;  %v3453_v59 = vld [vmem:[#allocation7 + $0x584] ss:$24 sps:$4 sm:$0xff]  }
 0x3d8   :  { %v1706_v27 = vpop.f32.mrf.mxu1  ;;  %v3156_v34 = vpop.f32.mrf.mxu0 }
 0x3d9   :  { %v1766_v57 = vmax.f32 %v1761_v47, 0.0  ;;  %v3945_v54 = vadd.f32 %v1706_v27, %v3900_v55  ;;  %v3474_v55 = vld [vmem:[#allocation10 + $0x30] sm:$0xff]  }
 0x3da   :  { %v1708_v28 = vpop.f32.mrf.mxu1  ;;  %v1763_v25 = vpop.f32.mrf.mxu0 }
 0x3db   :  { %v1767_v5 = vpack.c.bf16 %v1766_v57, %v1766_v57 }
 0x3dc   :  { %v1709_v11 = vpop.f32.mrf.mxu1  ;;  %v3157_v58 = vpop.f32.mrf.mxu0 }
 0x3dd   :  { %2089 = vmatmul.mubr.bf16.vlgmr.msra.gmra.mxu1 %v1767_v5  ;;  %2130 = vmatmul.mubr.bf16.vlgmr.msra.gmra.mxu0 %v1767_v5 }
 0x3de   :  { %2139 = vmatpush1.bf16.msra.mxu1 %v3445_v37  ;;  %2170 = vmatprep.mubr.bf16.mxu1 %v3666_v35  ;;  %v3482_v35 = vld [vmem:[#allocation10 + $0x20] sm:$0xff]  }
 0x3df   :  { %2140 = vmatprep.subr.bf16.mxu1 %v3450_v29  ;;  %3013 = vmatpush3.bf16.msra.mxu0 %v3470_v32 }
 0x3e0   :  { %3014 = vmatprep.subr.bf16.mxu0 %v3473_v15 }
 0x3e2   :  { %2141 = vmatpush1.bf16.msra.mxu1 %v3448_v50 }
 0x3e3   :  { %2142 = vmatprep.subr.bf16.mxu1 %v3453_v59  ;;  %3015 = vmatpush3.bf16.msra.mxu0 %v3474_v55 }
 0x3e4   :  { %3016 = vmatprep.subr.bf16.mxu0 %v3477_v60  ;;  %v3502_v60 = vld [vmem:[#allocation10 + $0x138] sm:$0xff]  }
 0x3e6   :  { %2143 = vmatpush1.bf16.msra.mxu1 %v3451_v33 }
 0x3e7   :  { %2144 = vmatprep.subr.bf16.mxu1 %v3456_v0  ;;  %3017 = vmatpush3.bf16.msra.mxu0 %v3478_v38  ;;  %v3506_v0 = vld [vmem:[#allocation10 + $0x128] sm:$0xff]   ;;  %v3507_v38 = vld [vmem:[#allocation10 + $0x160] sm:$0xff]  }
 0x3e8   :  { %3018 = vmatprep.subr.bf16.mxu0 %v3481_v17  ;;  %v3508_v17 = vld [vmem:[#allocation10 + $0x120] sm:$0xff]  }
 0x3ea   :  { %2145 = vmatpush1.bf16.msra.mxu1 %v3454_v39  ;;  %v3509_v39 = vld [vmem:[#allocation10 + $0x158] sm:$0xff]  }
 0x3eb   :  { %2146 = vmatprep.subr.bf16.mxu1 %v3459_v41  ;;  %3019 = vmatpush3.bf16.msra.mxu0 %v3482_v35  ;;  %v3510_v41 = vld [vmem:[#allocation10 + $0x118] sm:$0xff]   ;;  %v3511_v35 = vld [vmem:[#allocation10 + $0x150] sm:$0xff]  }
 0x3ec   :  { %3020 = vmatprep.subr.bf16.mxu0 %v3485_v42  ;;  %v3512_v42 = vld [vmem:[#allocation10 + $0x110] sm:$0xff]  }
 0x3ee   :  { %2147 = vmatpush1.bf16.msra.mxu1 %v3457_v43  ;;  %v3513_v43 = vld [vmem:[#allocation10 + $0x148] sm:$0xff]  }
 0x3ef   :  { %2148 = vmatprep.subr.bf16.mxu1 %v3462_v44  ;;  %3021 = vmatpush3.bf16.msra.mxu0 %v3486_v46  ;;  %v3514_v44 = vld [vmem:[#allocation10 + $0x108] sm:$0xff]  }
 0x3f0   :  { %3022 = vmatprep.subr.bf16.mxu0 %v3489_v48  ;;  %v3515_v48 = vld [vmem:[#allocation10 + $0x140] sm:$0xff]  }
 0x3f2   :  { %2149 = vmatpush1.bf16.msra.mxu1 %v3460_v49 }
 0x3f3   :  { %2150 = vmatprep.subr.bf16.mxu1 %v3465_v18  ;;  %3023 = vmatpush3.bf16.msra.mxu0 %v3490_v52 }
 0x3f4   :  { %3024 = vmatprep.subr.bf16.mxu0 %v3493_v1 }
 0x3f6   :  { %2151 = vmatpush1.bf16.msra.mxu1 %v3463_v30  ;;  %v3516_v30 = vld [vmem:[#allocation10 + $0x100] sm:$0xff]  }
 0x3f7   :  { %2152 = vmatprep.subr.bf16.mxu1 %v3468_v53  ;;  %3025 = vmatpush3.bf16.msra.mxu0 %v3494_v14 }
 0x3f8   :  { %3026 = vmatprep.subr.bf16.mxu0 %v3497_v7 }
 0x3fa   :  { %2153 = vmatpush1.bf16.msra.mxu1 %v3466_v56 }
 0x3fb   :  { %3034 = vmatprep.subr.bf16.mxu1 %v3471_v61  ;;  %3027 = vmatpush3.bf16.msra.mxu0 %v3498_v26 }
 0x3fc   :  { %3056 = vmatprep.subr.bf16.mxu0 %v3501_v51 }
 0x3fd   :  { %2171 = vmatmul.mubr.bf16.vlgmr.msra.gmra.mxu1 %v1767_v5 }
 0x3fe   :  { %3035 = vmatpush3.bf16.msra.mxu1 %v3472_v62 }
 0x3ff   :  { %3036 = vmatprep.subr.bf16.mxu1 %v3475_v63 }
 0x402   :  { %3037 = vmatpush3.bf16.msra.mxu1 %v3476_v19 }
 0x403   :  { %3038 = vmatprep.subr.bf16.mxu1 %v3479_v4 }
 0x406   :  { %3039 = vmatpush3.bf16.msra.mxu1 %v3480_v6 }
 0x407   :  { %3040 = vmatprep.subr.bf16.mxu1 %v3483_v8 }
 0x40a   :  { %3041 = vmatpush3.bf16.msra.mxu1 %v3484_v9 }
 0x40b   :  { %3042 = vmatprep.subr.bf16.mxu1 %v3487_v22 }
 0x40e   :  { %3043 = vmatpush3.bf16.msra.mxu1 %v3488_v10 }
 0x40f   :  { %3044 = vmatprep.subr.bf16.mxu1 %v3491_v12 }
 0x412   :  { %3045 = vmatpush3.bf16.msra.mxu1 %v3492_v13  ;;  %v2927_v13 = vld [vmem:[%s3966_s6] ss:$0 sm:$0xff] }
 0x413   :  { %3046 = vmatprep.subr.bf16.mxu1 %v3495_v2 }
 0x416   :  { %3047 = vmatpush3.bf16.msra.mxu1 %v3496_v3 }
 0x417   :  { %3048 = vmatprep.subr.bf16.mxu1 %v3499_v31 }
 0x41a   :  { %3049 = vmatpush3.bf16.msra.mxu1 %v3500_v20 }
 0x49d   :  { %v2090_v23 = vpop.f32.mrf.mxu1  ;;  %v2131_v24 = vpop.f32.mrf.mxu0 }
 0x49e   :  { %v2179_v47 = vadd.f32 %v2090_v23, %v3929_v40  ;;  %v2181_v27 = vadd.f32 %v2131_v24, %v3932_v16  ;;  %v3503_v16 = vld [vmem:[#allocation10 + $0x170] sm:$0xff]  }
 0x49f   :  { %v2092_v34 = vpop.f32.mrf.mxu1  ;;  %v2133_v57 = vpop.f32.mrf.mxu0 }
 0x4a0   :  { %v2180_v28 = vadd.f32 %v2092_v34, %v3935_v36  ;;  %v2182_v25 = vadd.f32 %v2133_v57, %v3938_v45  ;;  %v2185_v37 = vmax.f32 %v2179_v47, 0.0  ;;  %v2187_v5 = vmax.f32 %v2181_v27, 0.0  ;;  %v3504_v36 = vld [vmem:[#allocation10 + $0x130] sm:$0xff]   ;;  %v3505_v45 = vld [vmem:[#allocation10 + $0x168] sm:$0xff]  }
 0x4a1   :  { %v2094_v29 = vpop.f32.mrf.mxu1  ;;  %v2135_v32 = vpop.f32.mrf.mxu0 }
 0x4a2   :  { %v2186_v11 = vmax.f32 %v2180_v28, 0.0  ;;  %v2188_v58 = vmax.f32 %v2182_v25, 0.0  ;;  %v2191_v40 = vpack.c.bf16 %v2185_v37, %v2185_v37  ;;  %v2193_v33 = vpack.c.bf16 %v2187_v5, %v2187_v5 }
 0x4a3   :  { %v2095_v15 = vpop.f32.mrf.mxu1  ;;  %v2136_v50 = vpop.f32.mrf.mxu0 }
 0x4a4   :  { %v2192_v59 = vpack.c.bf16 %v2186_v11, %v2186_v11  ;;  %v2194_v55 = vpack.c.bf16 %v2188_v58, %v2188_v58 }
 0x4a6   :  { %2620 = vmatprep.mubr.bf16.mxu0 %v2192_v59  ;;  %2660 = vmatprep.mubr.bf16.mxu1 %v2194_v55 }
 0x4a7   :  { %2621 = vmatmul.mubr.bf16.vlgmr.msra.gmra.mxu0 %v2191_v40  ;;  %2661 = vmatmul.mubr.bf16.vlgmr.msra.gmra.mxu1 %v2193_v33 }
 0x4a8   :  { %3057 = vmatpush3.bf16.msra.mxu0 %v3502_v60 }
 0x4a9   :  { %3058 = vmatprep.subr.bf16.mxu0 %v3503_v16 }
 0x4ac   :  { %3059 = vmatpush3.bf16.msra.mxu0 %v3504_v36 }
 0x4ad   :  { %3060 = vmatprep.subr.bf16.mxu0 %v3505_v45 }
 0x4b0   :  { %3061 = vmatpush3.bf16.msra.mxu0 %v3506_v0 }
 0x4b1   :  { %3062 = vmatprep.subr.bf16.mxu0 %v3507_v38 }
 0x4b4   :  { %3063 = vmatpush3.bf16.msra.mxu0 %v3508_v17 }
 0x4b5   :  { %3064 = vmatprep.subr.bf16.mxu0 %v3509_v39 }
 0x4b8   :  { %3065 = vmatpush3.bf16.msra.mxu0 %v3510_v41 }
 0x4b9   :  { %3066 = vmatprep.subr.bf16.mxu0 %v3511_v35 }
 0x4bc   :  { %3067 = vmatpush3.bf16.msra.mxu0 %v3512_v42 }
 0x4bd   :  { %v2172_v46 = vpop.f32.mrf.mxu1  ;;  %3068 = vmatprep.subr.bf16.mxu0 %v3513_v43 }
 0x4be   :  { %v2183_v49 = vadd.f32 %v2172_v46, %v3941_v21 }
 0x4bf   :  { %v2174_v18 = vpop.f32.mrf.mxu1 }
 0x4c0   :  { %v2184_v52 = vadd.f32 %v2174_v18, %v3945_v54  ;;  %3069 = vmatpush3.bf16.msra.mxu0 %v3514_v44  ;;  %v2189_v53 = vmax.f32 %v2183_v49, 0.0 }
 0x4c1   :  { %v2176_v56 = vpop.f32.mrf.mxu1  ;;  %3070 = vmatprep.subr.bf16.mxu0 %v3515_v48 }
 0x4c2   :  { %v2190_v61 = vmax.f32 %v2184_v52, 0.0  ;;  %v2195_v19 = vpack.c.bf16 %v2189_v53, %v2189_v53 }
 0x4c3   :  { %v2177_v62 = vpop.f32.mrf.mxu1 }
 0x4c4   :  { %v2196_v63 = vpack.c.bf16 %v2190_v61, %v2190_v61  ;;  %3071 = vmatpush3.bf16.msra.mxu0 %v3516_v30 }
 0x4c6   :  { %2700 = vmatprep.mubr.bf16.mxu0 %v2196_v63 }
 0x4c7   :  { %2701 = vmatmul.mubr.bf16.vlgmr.msra.gmra.mxu0 %v2195_v19 }
 0x567   :  { %v3028_v4 = vpop.f32.mrf.mxu0  ;;  %v3050_v6 = vpop.f32.mrf.mxu1 }
 0x569   :  { %v3029_v8 = vpop.f32.mrf.mxu0  ;;  %v3051_v9 = vpop.f32.mrf.mxu1 }
 0x56a   :  { %v3030_v12 = vadd.f32 %v3029_v8, %v3028_v4  ;;  %v3052_v2 = vadd.f32 %v3051_v9, %v3050_v6 }
 0x56b   :  { %v3031_v21 = vpop.f32.mrf.mxu0  ;;  %v3053_v22 = vpop.f32.mrf.mxu1 }
 0x56c   :  { %v2623_v1 = vadd.f32 %v3030_v12, %v2927_v13 }
 0x56d   :  { %v3032_v10 = vpop.f32.mrf.mxu0  ;;  %v3054_v54 = vpop.f32.mrf.mxu1 }
 0x56e   :  { %v2663_v7 = vadd.f32 %v3052_v2, %v2623_v1 }
 0x587   :  { %v3072_v14 = vpop.f32.mrf.mxu0 }
 0x589   :  { %v3073_v3 = vpop.f32.mrf.mxu0 }
 0x58a   :  { %v3074_v26 = vadd.f32 %v3073_v3, %v3072_v14 }
 0x58b   :  { %v3075_v31 = vpop.f32.mrf.mxu0 }
 0x58c   :  { %v2703_v20 = vadd.f32 %v3074_v26, %v2663_v7 }
 0x58d   :  { %v3076_v51 = vpop.f32.mrf.mxu0 }
 0x58e   :  { %2708 = vst [vmem:[#allocation11] sm:$0x3] %v2703_v20 }
 0x58f   :  { %3636 = shalt.err (!%p3633_p1)
}
 0x590   :  { %2718 = dma.vmem_to_hbm [thread:$0]  %s2716_s8, 32, %s3967_s7, [#allocation4]  }
 0x591   :  { %3651 = dma.done.wait [#allocation4], 32  }
 0x592   :  { %3652 = vsyncadd [#allocation4], 4294967264 }
 0x593   :  { %2722 = vsyncpa [#allocation3], 1 }
 0x594   :  { %2723 = vsyncpa [#allocation6], 1 }
 0x595   :  { %2724 = vsyncpa [#allocation9], 1 }
 0x596   :  { %2725 = vsyncpa [#allocation4], 1 }

</bundles_post_ra>
